<compile_context>
chip_gen: v7x
topology: tpu7x:2x2x1
jax: 0.10.0
libtpu: 0.0.40
codegen_flags: <defaults>
</compile_context>

<pallas_src>
import jax
import jax.numpy as jnp
from jax import lax
from jax.experimental import pallas as pl
from jax.experimental.pallas import tpu as pltpu


def rnn_eeg_kernel(x_ref, h_ref,
                   wi0_ref, whcat_ref, bi0c_ref, bhn0_ref,
                   wi1_ref, bi1c_ref, bhn1_ref,
                   wo_ref, bo_ref,
                   out_ref, hout_ref,
                   gi0_ref, h1acc_ref):
    S = x_ref.shape[0]
    H = bhn0_ref.shape[1]

    whcat = whcat_ref[...]          # (2H, 6H) block-diagonal hidden weights
    wi1 = wi1_ref[...]              # (H, 3H)  layer-1 input weights
    bi1c = bi1c_ref[...]            # (1, 3H)  r/z biases pre-folded, n = bi only
    bhn0 = bhn0_ref[...]            # (1, H)   layer-0 hidden n-gate bias
    bhn1 = bhn1_ref[...]            # (1, H)   layer-1 hidden n-gate bias

    # Hoisted layer-0 input projection for ALL timesteps (one batched matmul,
    # biases already folded in bi0c).
    gi0_ref[...] = (
        jnp.dot(x_ref[...], wi0_ref[...], preferred_element_type=jnp.float32)
        + bi0c_ref[...])

    def step(t, carry):
        h0, h1 = carry                                   # (1, H) each
        # One MXU op for BOTH layers' hidden paths (block-diagonal weights).
        hcat = jnp.concatenate([h0, h1], axis=1)         # (1, 2H)
        ghcat = jnp.dot(hcat, whcat,
                        preferred_element_type=jnp.float32)   # (1, 6H)
        gh0 = ghcat[:, 0:3 * H]
        gh1 = ghcat[:, 3 * H:6 * H]

        # ---- layer 0 GRU cell (PyTorch gate order [r, z, n]) ----
        gi0 = gi0_ref[pl.ds(t, 1), :]                    # (1, 3H)
        r0 = jax.nn.sigmoid(gi0[:, 0:H] + gh0[:, 0:H])
        z0 = jax.nn.sigmoid(gi0[:, H:2 * H] + gh0[:, H:2 * H])
        n0 = jnp.tanh(gi0[:, 2 * H:3 * H] + r0 * (gh0[:, 2 * H:3 * H] + bhn0))
        h0n = (1.0 - z0) * n0 + z0 * h0

        # ---- layer 1 GRU cell ----
        gi1 = jnp.dot(h0n, wi1, preferred_element_type=jnp.float32) + bi1c
        r1 = jax.nn.sigmoid(gi1[:, 0:H] + gh1[:, 0:H])
        z1 = jax.nn.sigmoid(gi1[:, H:2 * H] + gh1[:, H:2 * H])
        n1 = jnp.tanh(gi1[:, 2 * H:3 * H] + r1 * (gh1[:, 2 * H:3 * H] + bhn1))
        h1n = (1.0 - z1) * n1 + z1 * h1

        # Head is applied after the loop; just stash h1 for this step.
        h1acc_ref[pl.ds(t, 1), :] = h1n
        return (h0n, h1n)

    carry = (h_ref[pl.ds(0, 1), :], h_ref[pl.ds(1, 1), :])
    if S <= 64:
        # Full unroll at trace time -> cross-step scheduling visibility:
        # step t+1's matmul push overlaps step t's sigmoid/tanh (EUP) work.
        for t in range(S):
            carry = step(t, carry)
        h0_fin, h1_fin = carry
    else:
        h0_fin, h1_fin = lax.fori_loop(0, S, step, carry)

    hout_ref[pl.ds(0, 1), :] = h0_fin
    hout_ref[pl.ds(1, 1), :] = h1_fin

    # Batched output head: ReLU -> Linear -> Sigmoid, single dense store.
    out_ref[...] = jax.nn.sigmoid(
        jnp.dot(jnp.maximum(h1acc_ref[...], 0.0), wo_ref[...],
                preferred_element_type=jnp.float32) + bo_ref[...])


def fuse_params(params):
    """One-time parameter prep: block-diag hidden weights + folded biases."""
    H = params["wh0"].shape[0]
    zeros = jnp.zeros((H, 3 * H), jnp.float32)
    whcat = jnp.concatenate(
        [jnp.concatenate([params["wh0"], zeros], axis=1),
         jnp.concatenate([zeros, params["wh1"]], axis=1)], axis=0)  # (2H, 6H)

    def fold(bi, bh):
        # r/z gates: (bi + bh) folded; n gate: bi only (bh_n must stay
        # separate because of the r * (Whn h + bhn) multiply).
        bc = jnp.concatenate([bi[:, :2 * H] + bh[:, :2 * H], bi[:, 2 * H:]],
                             axis=1)
        return bc, bh[:, 2 * H:]

    bi0c, bhn0 = fold(params["bi0"], params["bh0"])
    bi1c, bhn1 = fold(params["bi1"], params["bh1"])
    return {
        "wi0": params["wi0"], "whcat": whcat,
        "bi0c": bi0c, "bhn0": bhn0,
        "wi1": params["wi1"], "bi1c": bi1c, "bhn1": bhn1,
        "w_out": params["w_out"], "b_out": params["b_out"],
    }


def rnn_eeg_forward(x, h, fused):
    """x: (S, I) f32, h: (2, 1, H) f32 -> (out (S, 1, O), h_1 (2, 1, H))."""
    S, _ = x.shape
    L, B, H = h.shape
    assert L == 2 and B == 1
    O = fused["w_out"].shape[1]
    h2 = h.reshape(L, H)

    def vmem():
        return pl.BlockSpec(memory_space=pltpu.MemorySpace.VMEM)

    out, h_out = pl.pallas_call(
        rnn_eeg_kernel,
        out_shape=(jax.ShapeDtypeStruct((S, O), jnp.float32),
                   jax.ShapeDtypeStruct((L, H), jnp.float32)),
        in_specs=[vmem() for _ in range(11)],
        out_specs=(vmem(), vmem()),
        scratch_shapes=[pltpu.VMEM((S, 3 * H), jnp.float32),   # hoisted GI0
                        pltpu.VMEM((S, H), jnp.float32)],      # per-step h1
    )(x, h2,
      fused["wi0"], fused["whcat"], fused["bi0c"], fused["bhn0"],
      fused["wi1"], fused["bi1c"], fused["bhn1"],
      fused["w_out"], fused["b_out"])
    return out[:, None, :], h_out[:, None, :]


def init_params(key, I, H, O):
    """Deterministic PyTorch-style uniform(-1/sqrt(H), 1/sqrt(H)) init."""
    ks = jax.random.split(key, 10)
    s = 1.0 / float(jnp.sqrt(jnp.float32(H)))

    def u(k, shape):
        return jax.random.uniform(k, shape, jnp.float32, -s, s)

    # PyTorch stores weight_ih_l{k}: (3H, in), gate order [r, z, n].
    wih0 = u(ks[0], (3 * H, I)); whh0 = u(ks[1], (3 * H, H))
    bih0 = u(ks[2], (3 * H,));   bhh0 = u(ks[3], (3 * H,))
    wih1 = u(ks[4], (3 * H, H)); whh1 = u(ks[5], (3 * H, H))
    bih1 = u(ks[6], (3 * H,));   bhh1 = u(ks[7], (3 * H,))
    w_lin = u(ks[8], (O, H));    b_lin = u(ks[9], (O,))
    return {
        "wi0": wih0.T, "wh0": whh0.T,
        "bi0": bih0[None, :], "bh0": bhh0[None, :],
        "wi1": wih1.T, "wh1": whh1.T,
        "bi1": bih1[None, :], "bh1": bhh1[None, :],
        "w_out": w_lin.T, "b_out": b_lin[None, :],
    }


def reference_forward(x, h, params):
    """Pure-JAX reference of the PyTorch forward (same weight layout)."""
    H = params["wh0"].shape[0]

    def cell(x_t, h_prev, wi, wh, bi, bh):
        gi = jnp.dot(x_t, wi, precision=lax.Precision.HIGHEST) + bi
        gh = jnp.dot(h_prev, wh, precision=lax.Precision.HIGHEST) + bh
        r = jax.nn.sigmoid(gi[:, :H] + gh[:, :H])
        z = jax.nn.sigmoid(gi[:, H:2 * H] + gh[:, H:2 * H])
        n = jnp.tanh(gi[:, 2 * H:] + r * gh[:, 2 * H:])
        return (1.0 - z) * n + z * h_prev

    h0, h1 = h[0], h[1]   # (1, H) each
    outs = []
    for t in range(x.shape[0]):
        x_t = x[t:t + 1]
        h0 = cell(x_t, h0, params["wi0"], params["wh0"], params["bi0"], params["bh0"])
        h1 = cell(h0, h1, params["wi1"], params["wh1"], params["bi1"], params["bh1"])
        y = jax.nn.sigmoid(jnp.dot(jnp.maximum(h1, 0.0), params["w_out"],
                                   precision=lax.Precision.HIGHEST) + params["b_out"])
        outs.append(y)
    out = jnp.stack(outs, axis=0)                 # (S, 1, O)
    h_out = jnp.stack([h0, h1], axis=0)           # (2, 1, H)
    return out, h_out


if __name__ == "__main__":
    S, I, H, O = 8, 4, 32, 2   # seq=8, input_size=4, hidden=32, output=2

    key = jax.random.PRNGKey(0)
    kx, kh, kp = jax.random.split(key, 3)
    x = jax.random.normal(kx, (S, I), jnp.float32)       # (seq, input_size)
    h = jax.random.normal(kh, (2, 1, H), jnp.float32)    # (num_layers, batch=1, hidden)
    params = init_params(kp, I, H, O)
    fused = fuse_params(params)

    out, h_1 = rnn_eeg_forward(x, h, fused)
    jax.block_until_ready((out, h_1))

    ref_out, ref_h = reference_forward(x, h, params)
    assert out.shape == (S, 1, O) and h_1.shape == (2, 1, H)
    assert jnp.allclose(out, ref_out, atol=2e-2, rtol=2e-2), "output mismatch"
    assert jnp.allclose(h_1, ref_h, atol=2e-2, rtol=2e-2), "hidden-state mismatch"

    print("KERNEL_OK")
</pallas_src>

<mosaic_0001>
module attributes {stable_mosaic.version = 11 : i64} {
  func.func @rnn_eeg_kernel(%arg0: memref<8x4xf32, #tpu.memory_space<vmem>>, %arg1: memref<2x32xf32, #tpu.memory_space<vmem>>, %arg2: memref<4x96xf32, #tpu.memory_space<vmem>>, %arg3: memref<64x192xf32, #tpu.memory_space<vmem>>, %arg4: memref<1x96xf32, #tpu.memory_space<vmem>>, %arg5: memref<1x32xf32, #tpu.memory_space<vmem>>, %arg6: memref<32x96xf32, #tpu.memory_space<vmem>>, %arg7: memref<1x96xf32, #tpu.memory_space<vmem>>, %arg8: memref<1x32xf32, #tpu.memory_space<vmem>>, %arg9: memref<32x2xf32, #tpu.memory_space<vmem>>, %arg10: memref<1x2xf32, #tpu.memory_space<vmem>>, %arg11: memref<8x2xf32, #tpu.memory_space<vmem>>, %arg12: memref<2x32xf32, #tpu.memory_space<vmem>>, %arg13: memref<8x96xf32, #tpu.memory_space<vmem>>, %arg14: memref<8x32xf32, #tpu.memory_space<vmem>>) attributes {dimension_semantics = [], scalar_prefetch = 0 : i64, scratch_operands = 2 : i64, tpu.core_type = #tpu.core_type<tc>} {
    %c0 = arith.constant 0 : index
    %c0_0 = arith.constant 0 : index
    %0 = vector.load %arg3[%c0, %c0_0] : memref<64x192xf32, #tpu.memory_space<vmem>>, vector<64x192xf32>
    %c0_1 = arith.constant 0 : index
    %c0_2 = arith.constant 0 : index
    %1 = vector.load %arg6[%c0_1, %c0_2] : memref<32x96xf32, #tpu.memory_space<vmem>>, vector<32x96xf32>
    %c0_3 = arith.constant 0 : index
    %c0_4 = arith.constant 0 : index
    %2 = vector.load %arg7[%c0_3, %c0_4] : memref<1x96xf32, #tpu.memory_space<vmem>>, vector<1x96xf32>
    %c0_5 = arith.constant 0 : index
    %c0_6 = arith.constant 0 : index
    %3 = vector.load %arg5[%c0_5, %c0_6] : memref<1x32xf32, #tpu.memory_space<vmem>>, vector<1x32xf32>
    %c0_7 = arith.constant 0 : index
    %c0_8 = arith.constant 0 : index
    %4 = vector.load %arg8[%c0_7, %c0_8] : memref<1x32xf32, #tpu.memory_space<vmem>>, vector<1x32xf32>
    %c0_9 = arith.constant 0 : index
    %c0_10 = arith.constant 0 : index
    %5 = vector.load %arg0[%c0_9, %c0_10] : memref<8x4xf32, #tpu.memory_space<vmem>>, vector<8x4xf32>
    %c0_11 = arith.constant 0 : index
    %c0_12 = arith.constant 0 : index
    %6 = vector.load %arg2[%c0_11, %c0_12] : memref<4x96xf32, #tpu.memory_space<vmem>>, vector<4x96xf32>
    %cst = arith.constant dense<0.000000e+00> : vector<8x96xf32>
    %7 = tpu.matmul %5, %6, %cst {dimension_numbers = #tpu.dot_dimension_numbers<[1], [0], [0], [1], [0, 0, 1, 1], [], []>} : vector<8x4xf32>, vector<4x96xf32>, vector<8x96xf32> -> vector<8x96xf32>
    %c0_13 = arith.constant 0 : index
    %c0_14 = arith.constant 0 : index
    %8 = vector.load %arg4[%c0_13, %c0_14] : memref<1x96xf32, #tpu.memory_space<vmem>>, vector<1x96xf32>
    %9 = vector.broadcast %8 : vector<1x96xf32> to vector<8x96xf32>
    %10 = arith.addf %7, %9 : vector<8x96xf32>
    %c0_15 = arith.constant 0 : index
    %c0_16 = arith.constant 0 : index
    %11 = vector.load %arg13[%c0_15, %c0_16] : memref<8x96xf32, #tpu.memory_space<vmem>>, vector<8x96xf32>
    tpu.vector_store %arg13[%c0_15, %c0_16], %10 {strides = array<i32>} : memref<8x96xf32, #tpu.memory_space<vmem>>, vector<8x96xf32>,
    %c0_17 = arith.constant 0 : index
    %c0_18 = arith.constant 0 : index
    %12 = vector.load %arg1[%c0_17, %c0_18] : memref<2x32xf32, #tpu.memory_space<vmem>>, vector<1x32xf32>
    %c1 = arith.constant 1 : index
    %c0_19 = arith.constant 0 : index
    %13 = vector.load %arg1[%c1, %c0_19] : memref<2x32xf32, #tpu.memory_space<vmem>>, vector<1x32xf32>
    %14 = tpu.concatenate %12, %13 in 1 : vector<1x32xf32>, vector<1x32xf32> -> vector<1x64xf32>
    %cst_20 = arith.constant dense<0.000000e+00> : vector<1x192xf32>
    %15 = tpu.matmul %14, %0, %cst_20 {dimension_numbers = #tpu.dot_dimension_numbers<[1], [0], [0], [1], [0, 0, 1, 1], [], []>} : vector<1x64xf32>, vector<64x192xf32>, vector<1x192xf32> -> vector<1x192xf32>
    %16 = vector.extract_strided_slice %15 {offsets = [0, 0], sizes = [1, 96], strides = [1, 1]} : vector<1x192xf32> to vector<1x96xf32>
    %17 = vector.extract_strided_slice %15 {offsets = [0, 96], sizes = [1, 96], strides = [1, 1]} : vector<1x192xf32> to vector<1x96xf32>
    %c0_21 = arith.constant 0 : index
    %c0_22 = arith.constant 0 : index
    %18 = vector.load %arg13[%c0_21, %c0_22] : memref<8x96xf32, #tpu.memory_space<vmem>>, vector<1x96xf32>
    %19 = vector.extract_strided_slice %18 {offsets = [0, 0], sizes = [1, 32], strides = [1, 1]} : vector<1x96xf32> to vector<1x32xf32>
    %20 = vector.extract_strided_slice %16 {offsets = [0, 0], sizes = [1, 32], strides = [1, 1]} : vector<1x96xf32> to vector<1x32xf32>
    %21 = arith.addf %19, %20 : vector<1x32xf32>
    %22 = arith.negf %21 : vector<1x32xf32>
    %23 = math.exp %22 : vector<1x32xf32>
    %cst_23 = arith.constant 1.000000e+00 : f32
    %24 = vector.broadcast %cst_23 : f32 to vector<1x32xf32>
    %25 = arith.addf %24, %23 : vector<1x32xf32>
    %26 = arith.divf %24, %25 : vector<1x32xf32>
    %27 = vector.extract_strided_slice %18 {offsets = [0, 32], sizes = [1, 32], strides = [1, 1]} : vector<1x96xf32> to vector<1x32xf32>
    %28 = vector.extract_strided_slice %16 {offsets = [0, 32], sizes = [1, 32], strides = [1, 1]} : vector<1x96xf32> to vector<1x32xf32>
    %29 = arith.addf %27, %28 : vector<1x32xf32>
    %30 = arith.negf %29 : vector<1x32xf32>
    %31 = math.exp %30 : vector<1x32xf32>
    %cst_24 = arith.constant 1.000000e+00 : f32
    %32 = vector.broadcast %cst_24 : f32 to vector<1x32xf32>
    %33 = arith.addf %32, %31 : vector<1x32xf32>
    %34 = arith.divf %32, %33 : vector<1x32xf32>
    %35 = vector.extract_strided_slice %18 {offsets = [0, 64], sizes = [1, 32], strides = [1, 1]} : vector<1x96xf32> to vector<1x32xf32>
    %36 = vector.extract_strided_slice %16 {offsets = [0, 64], sizes = [1, 32], strides = [1, 1]} : vector<1x96xf32> to vector<1x32xf32>
    %37 = arith.addf %36, %3 : vector<1x32xf32>
    %38 = arith.mulf %26, %37 : vector<1x32xf32>
    %39 = arith.addf %35, %38 : vector<1x32xf32>
    %40 = math.tanh %39 : vector<1x32xf32>
    %cst_25 = arith.constant 1.000000e+00 : f32
    %41 = vector.broadcast %cst_25 : f32 to vector<1x32xf32>
    %42 = arith.subf %41, %34 : vector<1x32xf32>
    %43 = arith.mulf %42, %40 : vector<1x32xf32>
    %44 = arith.mulf %34, %12 : vector<1x32xf32>
    %45 = arith.addf %43, %44 : vector<1x32xf32>
    %cst_26 = arith.constant dense<0.000000e+00> : vector<1x96xf32>
    %46 = tpu.matmul %45, %1, %cst_26 {dimension_numbers = #tpu.dot_dimension_numbers<[1], [0], [0], [1], [0, 0, 1, 1], [], []>} : vector<1x32xf32>, vector<32x96xf32>, vector<1x96xf32> -> vector<1x96xf32>
    %47 = arith.addf %46, %2 : vector<1x96xf32>
    %48 = vector.extract_strided_slice %47 {offsets = [0, 0], sizes = [1, 32], strides = [1, 1]} : vector<1x96xf32> to vector<1x32xf32>
    %49 = vector.extract_strided_slice %17 {offsets = [0, 0], sizes = [1, 32], strides = [1, 1]} : vector<1x96xf32> to vector<1x32xf32>
    %50 = arith.addf %48, %49 : vector<1x32xf32>
    %51 = arith.negf %50 : vector<1x32xf32>
    %52 = math.exp %51 : vector<1x32xf32>
    %cst_27 = arith.constant 1.000000e+00 : f32
    %53 = vector.broadcast %cst_27 : f32 to vector<1x32xf32>
    %54 = arith.addf %53, %52 : vector<1x32xf32>
    %55 = arith.divf %53, %54 : vector<1x32xf32>
    %56 = vector.extract_strided_slice %47 {offsets = [0, 32], sizes = [1, 32], strides = [1, 1]} : vector<1x96xf32> to vector<1x32xf32>
    %57 = vector.extract_strided_slice %17 {offsets = [0, 32], sizes = [1, 32], strides = [1, 1]} : vector<1x96xf32> to vector<1x32xf32>
    %58 = arith.addf %56, %57 : vector<1x32xf32>
    %59 = arith.negf %58 : vector<1x32xf32>
    %60 = math.exp %59 : vector<1x32xf32>
    %cst_28 = arith.constant 1.000000e+00 : f32
    %61 = vector.broadcast %cst_28 : f32 to vector<1x32xf32>
    %62 = arith.addf %61, %60 : vector<1x32xf32>
    %63 = arith.divf %61, %62 : vector<1x32xf32>
    %64 = vector.extract_strided_slice %47 {offsets = [0, 64], sizes = [1, 32], strides = [1, 1]} : vector<1x96xf32> to vector<1x32xf32>
    %65 = vector.extract_strided_slice %17 {offsets = [0, 64], sizes = [1, 32], strides = [1, 1]} : vector<1x96xf32> to vector<1x32xf32>
    %66 = arith.addf %65, %4 : vector<1x32xf32>
    %67 = arith.mulf %55, %66 : vector<1x32xf32>
    %68 = arith.addf %64, %67 : vector<1x32xf32>
    %69 = math.tanh %68 : vector<1x32xf32>
    %cst_29 = arith.constant 1.000000e+00 : f32
    %70 = vector.broadcast %cst_29 : f32 to vector<1x32xf32>
    %71 = arith.subf %70, %63 : vector<1x32xf32>
    %72 = arith.mulf %71, %69 : vector<1x32xf32>
    %73 = arith.mulf %63, %13 : vector<1x32xf32>
    %74 = arith.addf %72, %73 : vector<1x32xf32>
    %c0_30 = arith.constant 0 : index
    %c0_31 = arith.constant 0 : index
    %75 = vector.load %arg14[%c0_30, %c0_31] : memref<8x32xf32, #tpu.memory_space<vmem>>, vector<1x32xf32>
    tpu.vector_store %arg14[%c0_30, %c0_31], %74 {strides = array<i32>} : memref<8x32xf32, #tpu.memory_space<vmem>>, vector<1x32xf32>,
    %76 = tpu.concatenate %45, %74 in 1 : vector<1x32xf32>, vector<1x32xf32> -> vector<1x64xf32>
    %cst_32 = arith.constant dense<0.000000e+00> : vector<1x192xf32>
    %77 = tpu.matmul %76, %0, %cst_32 {dimension_numbers = #tpu.dot_dimension_numbers<[1], [0], [0], [1], [0, 0, 1, 1], [], []>} : vector<1x64xf32>, vector<64x192xf32>, vector<1x192xf32> -> vector<1x192xf32>
    %78 = vector.extract_strided_slice %77 {offsets = [0, 0], sizes = [1, 96], strides = [1, 1]} : vector<1x192xf32> to vector<1x96xf32>
    %79 = vector.extract_strided_slice %77 {offsets = [0, 96], sizes = [1, 96], strides = [1, 1]} : vector<1x192xf32> to vector<1x96xf32>
    %c1_33 = arith.constant 1 : index
    %c0_34 = arith.constant 0 : index
    %80 = vector.load %arg13[%c1_33, %c0_34] : memref<8x96xf32, #tpu.memory_space<vmem>>, vector<1x96xf32>
    %81 = vector.extract_strided_slice %80 {offsets = [0, 0], sizes = [1, 32], strides = [1, 1]} : vector<1x96xf32> to vector<1x32xf32>
    %82 = vector.extract_strided_slice %78 {offsets = [0, 0], sizes = [1, 32], strides = [1, 1]} : vector<1x96xf32> to vector<1x32xf32>
    %83 = arith.addf %81, %82 : vector<1x32xf32>
    %84 = arith.negf %83 : vector<1x32xf32>
    %85 = math.exp %84 : vector<1x32xf32>
    %cst_35 = arith.constant 1.000000e+00 : f32
    %86 = vector.broadcast %cst_35 : f32 to vector<1x32xf32>
    %87 = arith.addf %86, %85 : vector<1x32xf32>
    %88 = arith.divf %86, %87 : vector<1x32xf32>
    %89 = vector.extract_strided_slice %80 {offsets = [0, 32], sizes = [1, 32], strides = [1, 1]} : vector<1x96xf32> to vector<1x32xf32>
    %90 = vector.extract_strided_slice %78 {offsets = [0, 32], sizes = [1, 32], strides = [1, 1]} : vector<1x96xf32> to vector<1x32xf32>
    %91 = arith.addf %89, %90 : vector<1x32xf32>
    %92 = arith.negf %91 : vector<1x32xf32>
    %93 = math.exp %92 : vector<1x32xf32>
    %cst_36 = arith.constant 1.000000e+00 : f32
    %94 = vector.broadcast %cst_36 : f32 to vector<1x32xf32>
    %95 = arith.addf %94, %93 : vector<1x32xf32>
    %96 = arith.divf %94, %95 : vector<1x32xf32>
    %97 = vector.extract_strided_slice %80 {offsets = [0, 64], sizes = [1, 32], strides = [1, 1]} : vector<1x96xf32> to vector<1x32xf32>
    %98 = vector.extract_strided_slice %78 {offsets = [0, 64], sizes = [1, 32], strides = [1, 1]} : vector<1x96xf32> to vector<1x32xf32>
    %99 = arith.addf %98, %3 : vector<1x32xf32>
    %100 = arith.mulf %88, %99 : vector<1x32xf32>
    %101 = arith.addf %97, %100 : vector<1x32xf32>
    %102 = math.tanh %101 : vector<1x32xf32>
    %cst_37 = arith.constant 1.000000e+00 : f32
    %103 = vector.broadcast %cst_37 : f32 to vector<1x32xf32>
    %104 = arith.subf %103, %96 : vector<1x32xf32>
    %105 = arith.mulf %104, %102 : vector<1x32xf32>
    %106 = arith.mulf %96, %45 : vector<1x32xf32>
    %107 = arith.addf %105, %106 : vector<1x32xf32>
    %cst_38 = arith.constant dense<0.000000e+00> : vector<1x96xf32>
    %108 = tpu.matmul %107, %1, %cst_38 {dimension_numbers = #tpu.dot_dimension_numbers<[1], [0], [0], [1], [0, 0, 1, 1], [], []>} : vector<1x32xf32>, vector<32x96xf32>, vector<1x96xf32> -> vector<1x96xf32>
    %109 = arith.addf %108, %2 : vector<1x96xf32>
    %110 = vector.extract_strided_slice %109 {offsets = [0, 0], sizes = [1, 32], strides = [1, 1]} : vector<1x96xf32> to vector<1x32xf32>
    %111 = vector.extract_strided_slice %79 {offsets = [0, 0], sizes = [1, 32], strides = [1, 1]} : vector<1x96xf32> to vector<1x32xf32>
    %112 = arith.addf %110, %111 : vector<1x32xf32>
    %113 = arith.negf %112 : vector<1x32xf32>
    %114 = math.exp %113 : vector<1x32xf32>
    %cst_39 = arith.constant 1.000000e+00 : f32
    %115 = vector.broadcast %cst_39 : f32 to vector<1x32xf32>
    %116 = arith.addf %115, %114 : vector<1x32xf32>
    %117 = arith.divf %115, %116 : vector<1x32xf32>
    %118 = vector.extract_strided_slice %109 {offsets = [0, 32], sizes = [1, 32], strides = [1, 1]} : vector<1x96xf32> to vector<1x32xf32>
    %119 = vector.extract_strided_slice %79 {offsets = [0, 32], sizes = [1, 32], strides = [1, 1]} : vector<1x96xf32> to vector<1x32xf32>
    %120 = arith.addf %118, %119 : vector<1x32xf32>
    %121 = arith.negf %120 : vector<1x32xf32>
    %122 = math.exp %121 : vector<1x32xf32>
    %cst_40 = arith.constant 1.000000e+00 : f32
    %123 = vector.broadcast %cst_40 : f32 to vector<1x32xf32>
    %124 = arith.addf %123, %122 : vector<1x32xf32>
    %125 = arith.divf %123, %124 : vector<1x32xf32>
    %126 = vector.extract_strided_slice %109 {offsets = [0, 64], sizes = [1, 32], strides = [1, 1]} : vector<1x96xf32> to vector<1x32xf32>
    %127 = vector.extract_strided_slice %79 {offsets = [0, 64], sizes = [1, 32], strides = [1, 1]} : vector<1x96xf32> to vector<1x32xf32>
    %128 = arith.addf %127, %4 : vector<1x32xf32>
    %129 = arith.mulf %117, %128 : vector<1x32xf32>
    %130 = arith.addf %126, %129 : vector<1x32xf32>
    %131 = math.tanh %130 : vector<1x32xf32>
    %cst_41 = arith.constant 1.000000e+00 : f32
    %132 = vector.broadcast %cst_41 : f32 to vector<1x32xf32>
    %133 = arith.subf %132, %125 : vector<1x32xf32>
    %134 = arith.mulf %133, %131 : vector<1x32xf32>
    %135 = arith.mulf %125, %74 : vector<1x32xf32>
    %136 = arith.addf %134, %135 : vector<1x32xf32>
    %c1_42 = arith.constant 1 : index
    %c0_43 = arith.constant 0 : index
    %137 = vector.load %arg14[%c1_42, %c0_43] : memref<8x32xf32, #tpu.memory_space<vmem>>, vector<1x32xf32>
    tpu.vector_store %arg14[%c1_42, %c0_43], %136 {strides = array<i32>} : memref<8x32xf32, #tpu.memory_space<vmem>>, vector<1x32xf32>,
    %138 = tpu.concatenate %107, %136 in 1 : vector<1x32xf32>, vector<1x32xf32> -> vector<1x64xf32>
    %cst_44 = arith.constant dense<0.000000e+00> : vector<1x192xf32>
    %139 = tpu.matmul %138, %0, %cst_44 {dimension_numbers = #tpu.dot_dimension_numbers<[1], [0], [0], [1], [0, 0, 1, 1], [], []>} : vector<1x64xf32>, vector<64x192xf32>, vector<1x192xf32> -> vector<1x192xf32>
    %140 = vector.extract_strided_slice %139 {offsets = [0, 0], sizes = [1, 96], strides = [1, 1]} : vector<1x192xf32> to vector<1x96xf32>
    %141 = vector.extract_strided_slice %139 {offsets = [0, 96], sizes = [1, 96], strides = [1, 1]} : vector<1x192xf32> to vector<1x96xf32>
    %c2 = arith.constant 2 : index
    %c0_45 = arith.constant 0 : index
    %142 = vector.load %arg13[%c2, %c0_45] : memref<8x96xf32, #tpu.memory_space<vmem>>, vector<1x96xf32>
    %143 = vector.extract_strided_slice %142 {offsets = [0, 0], sizes = [1, 32], strides = [1, 1]} : vector<1x96xf32> to vector<1x32xf32>
    %144 = vector.extract_strided_slice %140 {offsets = [0, 0], sizes = [1, 32], strides = [1, 1]} : vector<1x96xf32> to vector<1x32xf32>
    %145 = arith.addf %143, %144 : vector<1x32xf32>
    %146 = arith.negf %145 : vector<1x32xf32>
    %147 = math.exp %146 : vector<1x32xf32>
    %cst_46 = arith.constant 1.000000e+00 : f32
    %148 = vector.broadcast %cst_46 : f32 to vector<1x32xf32>
    %149 = arith.addf %148, %147 : vector<1x32xf32>
    %150 = arith.divf %148, %149 : vector<1x32xf32>
    %151 = vector.extract_strided_slice %142 {offsets = [0, 32], sizes = [1, 32], strides = [1, 1]} : vector<1x96xf32> to vector<1x32xf32>
    %152 = vector.extract_strided_slice %140 {offsets = [0, 32], sizes = [1, 32], strides = [1, 1]} : vector<1x96xf32> to vector<1x32xf32>
    %153 = arith.addf %151, %152 : vector<1x32xf32>
    %154 = arith.negf %153 : vector<1x32xf32>
    %155 = math.exp %154 : vector<1x32xf32>
    %cst_47 = arith.constant 1.000000e+00 : f32
    %156 = vector.broadcast %cst_47 : f32 to vector<1x32xf32>
    %157 = arith.addf %156, %155 : vector<1x32xf32>
    %158 = arith.divf %156, %157 : vector<1x32xf32>
    %159 = vector.extract_strided_slice %142 {offsets = [0, 64], sizes = [1, 32], strides = [1, 1]} : vector<1x96xf32> to vector<1x32xf32>
    %160 = vector.extract_strided_slice %140 {offsets = [0, 64], sizes = [1, 32], strides = [1, 1]} : vector<1x96xf32> to vector<1x32xf32>
    %161 = arith.addf %160, %3 : vector<1x32xf32>
    %162 = arith.mulf %150, %161 : vector<1x32xf32>
    %163 = arith.addf %159, %162 : vector<1x32xf32>
    %164 = math.tanh %163 : vector<1x32xf32>
    %cst_48 = arith.constant 1.000000e+00 : f32
    %165 = vector.broadcast %cst_48 : f32 to vector<1x32xf32>
    %166 = arith.subf %165, %158 : vector<1x32xf32>
    %167 = arith.mulf %166, %164 : vector<1x32xf32>
    %168 = arith.mulf %158, %107 : vector<1x32xf32>
    %169 = arith.addf %167, %168 : vector<1x32xf32>
    %cst_49 = arith.constant dense<0.000000e+00> : vector<1x96xf32>
    %170 = tpu.matmul %169, %1, %cst_49 {dimension_numbers = #tpu.dot_dimension_numbers<[1], [0], [0], [1], [0, 0, 1, 1], [], []>} : vector<1x32xf32>, vector<32x96xf32>, vector<1x96xf32> -> vector<1x96xf32>
    %171 = arith.addf %170, %2 : vector<1x96xf32>
    %172 = vector.extract_strided_slice %171 {offsets = [0, 0], sizes = [1, 32], strides = [1, 1]} : vector<1x96xf32> to vector<1x32xf32>
    %173 = vector.extract_strided_slice %141 {offsets = [0, 0], sizes = [1, 32], strides = [1, 1]} : vector<1x96xf32> to vector<1x32xf32>
    %174 = arith.addf %172, %173 : vector<1x32xf32>
    %175 = arith.negf %174 : vector<1x32xf32>
    %176 = math.exp %175 : vector<1x32xf32>
    %cst_50 = arith.constant 1.000000e+00 : f32
    %177 = vector.broadcast %cst_50 : f32 to vector<1x32xf32>
    %178 = arith.addf %177, %176 : vector<1x32xf32>
    %179 = arith.divf %177, %178 : vector<1x32xf32>
    %180 = vector.extract_strided_slice %171 {offsets = [0, 32], sizes = [1, 32], strides = [1, 1]} : vector<1x96xf32> to vector<1x32xf32>
    %181 = vector.extract_strided_slice %141 {offsets = [0, 32], sizes = [1, 32], strides = [1, 1]} : vector<1x96xf32> to vector<1x32xf32>
    %182 = arith.addf %180, %181 : vector<1x32xf32>
    %183 = arith.negf %182 : vector<1x32xf32>
    %184 = math.exp %183 : vector<1x32xf32>
    %cst_51 = arith.constant 1.000000e+00 : f32
    %185 = vector.broadcast %cst_51 : f32 to vector<1x32xf32>
    %186 = arith.addf %185, %184 : vector<1x32xf32>
    %187 = arith.divf %185, %186 : vector<1x32xf32>
    %188 = vector.extract_strided_slice %171 {offsets = [0, 64], sizes = [1, 32], strides = [1, 1]} : vector<1x96xf32> to vector<1x32xf32>
    %189 = vector.extract_strided_slice %141 {offsets = [0, 64], sizes = [1, 32], strides = [1, 1]} : vector<1x96xf32> to vector<1x32xf32>
    %190 = arith.addf %189, %4 : vector<1x32xf32>
    %191 = arith.mulf %179, %190 : vector<1x32xf32>
    %192 = arith.addf %188, %191 : vector<1x32xf32>
    %193 = math.tanh %192 : vector<1x32xf32>
    %cst_52 = arith.constant 1.000000e+00 : f32
    %194 = vector.broadcast %cst_52 : f32 to vector<1x32xf32>
    %195 = arith.subf %194, %187 : vector<1x32xf32>
    %196 = arith.mulf %195, %193 : vector<1x32xf32>
    %197 = arith.mulf %187, %136 : vector<1x32xf32>
    %198 = arith.addf %196, %197 : vector<1x32xf32>
    %c2_53 = arith.constant 2 : index
    %c0_54 = arith.constant 0 : index
    %199 = vector.load %arg14[%c2_53, %c0_54] : memref<8x32xf32, #tpu.memory_space<vmem>>, vector<1x32xf32>
    tpu.vector_store %arg14[%c2_53, %c0_54], %198 {strides = array<i32>} : memref<8x32xf32, #tpu.memory_space<vmem>>, vector<1x32xf32>,
    %200 = tpu.concatenate %169, %198 in 1 : vector<1x32xf32>, vector<1x32xf32> -> vector<1x64xf32>
    %cst_55 = arith.constant dense<0.000000e+00> : vector<1x192xf32>
    %201 = tpu.matmul %200, %0, %cst_55 {dimension_numbers = #tpu.dot_dimension_numbers<[1], [0], [0], [1], [0, 0, 1, 1], [], []>} : vector<1x64xf32>, vector<64x192xf32>, vector<1x192xf32> -> vector<1x192xf32>
    %202 = vector.extract_strided_slice %201 {offsets = [0, 0], sizes = [1, 96], strides = [1, 1]} : vector<1x192xf32> to vector<1x96xf32>
    %203 = vector.extract_strided_slice %201 {offsets = [0, 96], sizes = [1, 96], strides = [1, 1]} : vector<1x192xf32> to vector<1x96xf32>
    %c3 = arith.constant 3 : index
    %c0_56 = arith.constant 0 : index
    %204 = vector.load %arg13[%c3, %c0_56] : memref<8x96xf32, #tpu.memory_space<vmem>>, vector<1x96xf32>
    %205 = vector.extract_strided_slice %204 {offsets = [0, 0], sizes = [1, 32], strides = [1, 1]} : vector<1x96xf32> to vector<1x32xf32>
    %206 = vector.extract_strided_slice %202 {offsets = [0, 0], sizes = [1, 32], strides = [1, 1]} : vector<1x96xf32> to vector<1x32xf32>
    %207 = arith.addf %205, %206 : vector<1x32xf32>
    %208 = arith.negf %207 : vector<1x32xf32>
    %209 = math.exp %208 : vector<1x32xf32>
    %cst_57 = arith.constant 1.000000e+00 : f32
    %210 = vector.broadcast %cst_57 : f32 to vector<1x32xf32>
    %211 = arith.addf %210, %209 : vector<1x32xf32>
    %212 = arith.divf %210, %211 : vector<1x32xf32>
    %213 = vector.extract_strided_slice %204 {offsets = [0, 32], sizes = [1, 32], strides = [1, 1]} : vector<1x96xf32> to vector<1x32xf32>
    %214 = vector.extract_strided_slice %202 {offsets = [0, 32], sizes = [1, 32], strides = [1, 1]} : vector<1x96xf32> to vector<1x32xf32>
    %215 = arith.addf %213, %214 : vector<1x32xf32>
    %216 = arith.negf %215 : vector<1x32xf32>
    %217 = math.exp %216 : vector<1x32xf32>
    %cst_58 = arith.constant 1.000000e+00 : f32
    %218 = vector.broadcast %cst_58 : f32 to vector<1x32xf32>
    %219 = arith.addf %218, %217 : vector<1x32xf32>
    %220 = arith.divf %218, %219 : vector<1x32xf32>
    %221 = vector.extract_strided_slice %204 {offsets = [0, 64], sizes = [1, 32], strides = [1, 1]} : vector<1x96xf32> to vector<1x32xf32>
    %222 = vector.extract_strided_slice %202 {offsets = [0, 64], sizes = [1, 32], strides = [1, 1]} : vector<1x96xf32> to vector<1x32xf32>
    %223 = arith.addf %222, %3 : vector<1x32xf32>
    %224 = arith.mulf %212, %223 : vector<1x32xf32>
    %225 = arith.addf %221, %224 : vector<1x32xf32>
    %226 = math.tanh %225 : vector<1x32xf32>
    %cst_59 = arith.constant 1.000000e+00 : f32
    %227 = vector.broadcast %cst_59 : f32 to vector<1x32xf32>
    %228 = arith.subf %227, %220 : vector<1x32xf32>
    %229 = arith.mulf %228, %226 : vector<1x32xf32>
    %230 = arith.mulf %220, %169 : vector<1x32xf32>
    %231 = arith.addf %229, %230 : vector<1x32xf32>
    %cst_60 = arith.constant dense<0.000000e+00> : vector<1x96xf32>
    %232 = tpu.matmul %231, %1, %cst_60 {dimension_numbers = #tpu.dot_dimension_numbers<[1], [0], [0], [1], [0, 0, 1, 1], [], []>} : vector<1x32xf32>, vector<32x96xf32>, vector<1x96xf32> -> vector<1x96xf32>
    %233 = arith.addf %232, %2 : vector<1x96xf32>
    %234 = vector.extract_strided_slice %233 {offsets = [0, 0], sizes = [1, 32], strides = [1, 1]} : vector<1x96xf32> to vector<1x32xf32>
    %235 = vector.extract_strided_slice %203 {offsets = [0, 0], sizes = [1, 32], strides = [1, 1]} : vector<1x96xf32> to vector<1x32xf32>
    %236 = arith.addf %234, %235 : vector<1x32xf32>
    %237 = arith.negf %236 : vector<1x32xf32>
    %238 = math.exp %237 : vector<1x32xf32>
    %cst_61 = arith.constant 1.000000e+00 : f32
    %239 = vector.broadcast %cst_61 : f32 to vector<1x32xf32>
    %240 = arith.addf %239, %238 : vector<1x32xf32>
    %241 = arith.divf %239, %240 : vector<1x32xf32>
    %242 = vector.extract_strided_slice %233 {offsets = [0, 32], sizes = [1, 32], strides = [1, 1]} : vector<1x96xf32> to vector<1x32xf32>
    %243 = vector.extract_strided_slice %203 {offsets = [0, 32], sizes = [1, 32], strides = [1, 1]} : vector<1x96xf32> to vector<1x32xf32>
    %244 = arith.addf %242, %243 : vector<1x32xf32>
    %245 = arith.negf %244 : vector<1x32xf32>
    %246 = math.exp %245 : vector<1x32xf32>
    %cst_62 = arith.constant 1.000000e+00 : f32
    %247 = vector.broadcast %cst_62 : f32 to vector<1x32xf32>
    %248 = arith.addf %247, %246 : vector<1x32xf32>
    %249 = arith.divf %247, %248 : vector<1x32xf32>
    %250 = vector.extract_strided_slice %233 {offsets = [0, 64], sizes = [1, 32], strides = [1, 1]} : vector<1x96xf32> to vector<1x32xf32>
    %251 = vector.extract_strided_slice %203 {offsets = [0, 64], sizes = [1, 32], strides = [1, 1]} : vector<1x96xf32> to vector<1x32xf32>
    %252 = arith.addf %251, %4 : vector<1x32xf32>
    %253 = arith.mulf %241, %252 : vector<1x32xf32>
    %254 = arith.addf %250, %253 : vector<1x32xf32>
    %255 = math.tanh %254 : vector<1x32xf32>
    %cst_63 = arith.constant 1.000000e+00 : f32
    %256 = vector.broadcast %cst_63 : f32 to vector<1x32xf32>
    %257 = arith.subf %256, %249 : vector<1x32xf32>
    %258 = arith.mulf %257, %255 : vector<1x32xf32>
    %259 = arith.mulf %249, %198 : vector<1x32xf32>
    %260 = arith.addf %258, %259 : vector<1x32xf32>
    %c3_64 = arith.constant 3 : index
    %c0_65 = arith.constant 0 : index
    %261 = vector.load %arg14[%c3_64, %c0_65] : memref<8x32xf32, #tpu.memory_space<vmem>>, vector<1x32xf32>
    tpu.vector_store %arg14[%c3_64, %c0_65], %260 {strides = array<i32>} : memref<8x32xf32, #tpu.memory_space<vmem>>, vector<1x32xf32>,
    %262 = tpu.concatenate %231, %260 in 1 : vector<1x32xf32>, vector<1x32xf32> -> vector<1x64xf32>
    %cst_66 = arith.constant dense<0.000000e+00> : vector<1x192xf32>
    %263 = tpu.matmul %262, %0, %cst_66 {dimension_numbers = #tpu.dot_dimension_numbers<[1], [0], [0], [1], [0, 0, 1, 1], [], []>} : vector<1x64xf32>, vector<64x192xf32>, vector<1x192xf32> -> vector<1x192xf32>
    %264 = vector.extract_strided_slice %263 {offsets = [0, 0], sizes = [1, 96], strides = [1, 1]} : vector<1x192xf32> to vector<1x96xf32>
    %265 = vector.extract_strided_slice %263 {offsets = [0, 96], sizes = [1, 96], strides = [1, 1]} : vector<1x192xf32> to vector<1x96xf32>
    %c4 = arith.constant 4 : index
    %c0_67 = arith.constant 0 : index
    %266 = vector.load %arg13[%c4, %c0_67] : memref<8x96xf32, #tpu.memory_space<vmem>>, vector<1x96xf32>
    %267 = vector.extract_strided_slice %266 {offsets = [0, 0], sizes = [1, 32], strides = [1, 1]} : vector<1x96xf32> to vector<1x32xf32>
    %268 = vector.extract_strided_slice %264 {offsets = [0, 0], sizes = [1, 32], strides = [1, 1]} : vector<1x96xf32> to vector<1x32xf32>
    %269 = arith.addf %267, %268 : vector<1x32xf32>
    %270 = arith.negf %269 : vector<1x32xf32>
    %271 = math.exp %270 : vector<1x32xf32>
    %cst_68 = arith.constant 1.000000e+00 : f32
    %272 = vector.broadcast %cst_68 : f32 to vector<1x32xf32>
    %273 = arith.addf %272, %271 : vector<1x32xf32>
    %274 = arith.divf %272, %273 : vector<1x32xf32>
    %275 = vector.extract_strided_slice %266 {offsets = [0, 32], sizes = [1, 32], strides = [1, 1]} : vector<1x96xf32> to vector<1x32xf32>
    %276 = vector.extract_strided_slice %264 {offsets = [0, 32], sizes = [1, 32], strides = [1, 1]} : vector<1x96xf32> to vector<1x32xf32>
    %277 = arith.addf %275, %276 : vector<1x32xf32>
    %278 = arith.negf %277 : vector<1x32xf32>
    %279 = math.exp %278 : vector<1x32xf32>
    %cst_69 = arith.constant 1.000000e+00 : f32
    %280 = vector.broadcast %cst_69 : f32 to vector<1x32xf32>
    %281 = arith.addf %280, %279 : vector<1x32xf32>
    %282 = arith.divf %280, %281 : vector<1x32xf32>
    %283 = vector.extract_strided_slice %266 {offsets = [0, 64], sizes = [1, 32], strides = [1, 1]} : vector<1x96xf32> to vector<1x32xf32>
    %284 = vector.extract_strided_slice %264 {offsets = [0, 64], sizes = [1, 32], strides = [1, 1]} : vector<1x96xf32> to vector<1x32xf32>
    %285 = arith.addf %284, %3 : vector<1x32xf32>
    %286 = arith.mulf %274, %285 : vector<1x32xf32>
    %287 = arith.addf %283, %286 : vector<1x32xf32>
    %288 = math.tanh %287 : vector<1x32xf32>
    %cst_70 = arith.constant 1.000000e+00 : f32
    %289 = vector.broadcast %cst_70 : f32 to vector<1x32xf32>
    %290 = arith.subf %289, %282 : vector<1x32xf32>
    %291 = arith.mulf %290, %288 : vector<1x32xf32>
    %292 = arith.mulf %282, %231 : vector<1x32xf32>
    %293 = arith.addf %291, %292 : vector<1x32xf32>
    %cst_71 = arith.constant dense<0.000000e+00> : vector<1x96xf32>
    %294 = tpu.matmul %293, %1, %cst_71 {dimension_numbers = #tpu.dot_dimension_numbers<[1], [0], [0], [1], [0, 0, 1, 1], [], []>} : vector<1x32xf32>, vector<32x96xf32>, vector<1x96xf32> -> vector<1x96xf32>
    %295 = arith.addf %294, %2 : vector<1x96xf32>
    %296 = vector.extract_strided_slice %295 {offsets = [0, 0], sizes = [1, 32], strides = [1, 1]} : vector<1x96xf32> to vector<1x32xf32>
    %297 = vector.extract_strided_slice %265 {offsets = [0, 0], sizes = [1, 32], strides = [1, 1]} : vector<1x96xf32> to vector<1x32xf32>
    %298 = arith.addf %296, %297 : vector<1x32xf32>
    %299 = arith.negf %298 : vector<1x32xf32>
    %300 = math.exp %299 : vector<1x32xf32>
    %cst_72 = arith.constant 1.000000e+00 : f32
    %301 = vector.broadcast %cst_72 : f32 to vector<1x32xf32>
    %302 = arith.addf %301, %300 : vector<1x32xf32>
    %303 = arith.divf %301, %302 : vector<1x32xf32>
    %304 = vector.extract_strided_slice %295 {offsets = [0, 32], sizes = [1, 32], strides = [1, 1]} : vector<1x96xf32> to vector<1x32xf32>
    %305 = vector.extract_strided_slice %265 {offsets = [0, 32], sizes = [1, 32], strides = [1, 1]} : vector<1x96xf32> to vector<1x32xf32>
    %306 = arith.addf %304, %305 : vector<1x32xf32>
    %307 = arith.negf %306 : vector<1x32xf32>
    %308 = math.exp %307 : vector<1x32xf32>
    %cst_73 = arith.constant 1.000000e+00 : f32
    %309 = vector.broadcast %cst_73 : f32 to vector<1x32xf32>
    %310 = arith.addf %309, %308 : vector<1x32xf32>
    %311 = arith.divf %309, %310 : vector<1x32xf32>
    %312 = vector.extract_strided_slice %295 {offsets = [0, 64], sizes = [1, 32], strides = [1, 1]} : vector<1x96xf32> to vector<1x32xf32>
    %313 = vector.extract_strided_slice %265 {offsets = [0, 64], sizes = [1, 32], strides = [1, 1]} : vector<1x96xf32> to vector<1x32xf32>
    %314 = arith.addf %313, %4 : vector<1x32xf32>
    %315 = arith.mulf %303, %314 : vector<1x32xf32>
    %316 = arith.addf %312, %315 : vector<1x32xf32>
    %317 = math.tanh %316 : vector<1x32xf32>
    %cst_74 = arith.constant 1.000000e+00 : f32
    %318 = vector.broadcast %cst_74 : f32 to vector<1x32xf32>
    %319 = arith.subf %318, %311 : vector<1x32xf32>
    %320 = arith.mulf %319, %317 : vector<1x32xf32>
    %321 = arith.mulf %311, %260 : vector<1x32xf32>
    %322 = arith.addf %320, %321 : vector<1x32xf32>
    %c4_75 = arith.constant 4 : index
    %c0_76 = arith.constant 0 : index
    %323 = vector.load %arg14[%c4_75, %c0_76] : memref<8x32xf32, #tpu.memory_space<vmem>>, vector<1x32xf32>
    tpu.vector_store %arg14[%c4_75, %c0_76], %322 {strides = array<i32>} : memref<8x32xf32, #tpu.memory_space<vmem>>, vector<1x32xf32>,
    %324 = tpu.concatenate %293, %322 in 1 : vector<1x32xf32>, vector<1x32xf32> -> vector<1x64xf32>
    %cst_77 = arith.constant dense<0.000000e+00> : vector<1x192xf32>
    %325 = tpu.matmul %324, %0, %cst_77 {dimension_numbers = #tpu.dot_dimension_numbers<[1], [0], [0], [1], [0, 0, 1, 1], [], []>} : vector<1x64xf32>, vector<64x192xf32>, vector<1x192xf32> -> vector<1x192xf32>
    %326 = vector.extract_strided_slice %325 {offsets = [0, 0], sizes = [1, 96], strides = [1, 1]} : vector<1x192xf32> to vector<1x96xf32>
    %327 = vector.extract_strided_slice %325 {offsets = [0, 96], sizes = [1, 96], strides = [1, 1]} : vector<1x192xf32> to vector<1x96xf32>
    %c5 = arith.constant 5 : index
    %c0_78 = arith.constant 0 : index
    %328 = vector.load %arg13[%c5, %c0_78] : memref<8x96xf32, #tpu.memory_space<vmem>>, vector<1x96xf32>
    %329 = vector.extract_strided_slice %328 {offsets = [0, 0], sizes = [1, 32], strides = [1, 1]} : vector<1x96xf32> to vector<1x32xf32>
    %330 = vector.extract_strided_slice %326 {offsets = [0, 0], sizes = [1, 32], strides = [1, 1]} : vector<1x96xf32> to vector<1x32xf32>
    %331 = arith.addf %329, %330 : vector<1x32xf32>
    %332 = arith.negf %331 : vector<1x32xf32>
    %333 = math.exp %332 : vector<1x32xf32>
    %cst_79 = arith.constant 1.000000e+00 : f32
    %334 = vector.broadcast %cst_79 : f32 to vector<1x32xf32>
    %335 = arith.addf %334, %333 : vector<1x32xf32>
    %336 = arith.divf %334, %335 : vector<1x32xf32>
    %337 = vector.extract_strided_slice %328 {offsets = [0, 32], sizes = [1, 32], strides = [1, 1]} : vector<1x96xf32> to vector<1x32xf32>
    %338 = vector.extract_strided_slice %326 {offsets = [0, 32], sizes = [1, 32], strides = [1, 1]} : vector<1x96xf32> to vector<1x32xf32>
    %339 = arith.addf %337, %338 : vector<1x32xf32>
    %340 = arith.negf %339 : vector<1x32xf32>
    %341 = math.exp %340 : vector<1x32xf32>
    %cst_80 = arith.constant 1.000000e+00 : f32
    %342 = vector.broadcast %cst_80 : f32 to vector<1x32xf32>
    %343 = arith.addf %342, %341 : vector<1x32xf32>
    %344 = arith.divf %342, %343 : vector<1x32xf32>
    %345 = vector.extract_strided_slice %328 {offsets = [0, 64], sizes = [1, 32], strides = [1, 1]} : vector<1x96xf32> to vector<1x32xf32>
    %346 = vector.extract_strided_slice %326 {offsets = [0, 64], sizes = [1, 32], strides = [1, 1]} : vector<1x96xf32> to vector<1x32xf32>
    %347 = arith.addf %346, %3 : vector<1x32xf32>
    %348 = arith.mulf %336, %347 : vector<1x32xf32>
    %349 = arith.addf %345, %348 : vector<1x32xf32>
    %350 = math.tanh %349 : vector<1x32xf32>
    %cst_81 = arith.constant 1.000000e+00 : f32
    %351 = vector.broadcast %cst_81 : f32 to vector<1x32xf32>
    %352 = arith.subf %351, %344 : vector<1x32xf32>
    %353 = arith.mulf %352, %350 : vector<1x32xf32>
    %354 = arith.mulf %344, %293 : vector<1x32xf32>
    %355 = arith.addf %353, %354 : vector<1x32xf32>
    %cst_82 = arith.constant dense<0.000000e+00> : vector<1x96xf32>
    %356 = tpu.matmul %355, %1, %cst_82 {dimension_numbers = #tpu.dot_dimension_numbers<[1], [0], [0], [1], [0, 0, 1, 1], [], []>} : vector<1x32xf32>, vector<32x96xf32>, vector<1x96xf32> -> vector<1x96xf32>
    %357 = arith.addf %356, %2 : vector<1x96xf32>
    %358 = vector.extract_strided_slice %357 {offsets = [0, 0], sizes = [1, 32], strides = [1, 1]} : vector<1x96xf32> to vector<1x32xf32>
    %359 = vector.extract_strided_slice %327 {offsets = [0, 0], sizes = [1, 32], strides = [1, 1]} : vector<1x96xf32> to vector<1x32xf32>
    %360 = arith.addf %358, %359 : vector<1x32xf32>
    %361 = arith.negf %360 : vector<1x32xf32>
    %362 = math.exp %361 : vector<1x32xf32>
    %cst_83 = arith.constant 1.000000e+00 : f32
    %363 = vector.broadcast %cst_83 : f32 to vector<1x32xf32>
    %364 = arith.addf %363, %362 : vector<1x32xf32>
    %365 = arith.divf %363, %364 : vector<1x32xf32>
    %366 = vector.extract_strided_slice %357 {offsets = [0, 32], sizes = [1, 32], strides = [1, 1]} : vector<1x96xf32> to vector<1x32xf32>
    %367 = vector.extract_strided_slice %327 {offsets = [0, 32], sizes = [1, 32], strides = [1, 1]} : vector<1x96xf32> to vector<1x32xf32>
    %368 = arith.addf %366, %367 : vector<1x32xf32>
    %369 = arith.negf %368 : vector<1x32xf32>
    %370 = math.exp %369 : vector<1x32xf32>
    %cst_84 = arith.constant 1.000000e+00 : f32
    %371 = vector.broadcast %cst_84 : f32 to vector<1x32xf32>
    %372 = arith.addf %371, %370 : vector<1x32xf32>
    %373 = arith.divf %371, %372 : vector<1x32xf32>
    %374 = vector.extract_strided_slice %357 {offsets = [0, 64], sizes = [1, 32], strides = [1, 1]} : vector<1x96xf32> to vector<1x32xf32>
    %375 = vector.extract_strided_slice %327 {offsets = [0, 64], sizes = [1, 32], strides = [1, 1]} : vector<1x96xf32> to vector<1x32xf32>
    %376 = arith.addf %375, %4 : vector<1x32xf32>
    %377 = arith.mulf %365, %376 : vector<1x32xf32>
    %378 = arith.addf %374, %377 : vector<1x32xf32>
    %379 = math.tanh %378 : vector<1x32xf32>
    %cst_85 = arith.constant 1.000000e+00 : f32
    %380 = vector.broadcast %cst_85 : f32 to vector<1x32xf32>
    %381 = arith.subf %380, %373 : vector<1x32xf32>
    %382 = arith.mulf %381, %379 : vector<1x32xf32>
    %383 = arith.mulf %373, %322 : vector<1x32xf32>
    %384 = arith.addf %382, %383 : vector<1x32xf32>
    %c5_86 = arith.constant 5 : index
    %c0_87 = arith.constant 0 : index
    %385 = vector.load %arg14[%c5_86, %c0_87] : memref<8x32xf32, #tpu.memory_space<vmem>>, vector<1x32xf32>
    tpu.vector_store %arg14[%c5_86, %c0_87], %384 {strides = array<i32>} : memref<8x32xf32, #tpu.memory_space<vmem>>, vector<1x32xf32>,
    %386 = tpu.concatenate %355, %384 in 1 : vector<1x32xf32>, vector<1x32xf32> -> vector<1x64xf32>
    %cst_88 = arith.constant dense<0.000000e+00> : vector<1x192xf32>
    %387 = tpu.matmul %386, %0, %cst_88 {dimension_numbers = #tpu.dot_dimension_numbers<[1], [0], [0], [1], [0, 0, 1, 1], [], []>} : vector<1x64xf32>, vector<64x192xf32>, vector<1x192xf32> -> vector<1x192xf32>
    %388 = vector.extract_strided_slice %387 {offsets = [0, 0], sizes = [1, 96], strides = [1, 1]} : vector<1x192xf32> to vector<1x96xf32>
    %389 = vector.extract_strided_slice %387 {offsets = [0, 96], sizes = [1, 96], strides = [1, 1]} : vector<1x192xf32> to vector<1x96xf32>
    %c6 = arith.constant 6 : index
    %c0_89 = arith.constant 0 : index
    %390 = vector.load %arg13[%c6, %c0_89] : memref<8x96xf32, #tpu.memory_space<vmem>>, vector<1x96xf32>
    %391 = vector.extract_strided_slice %390 {offsets = [0, 0], sizes = [1, 32], strides = [1, 1]} : vector<1x96xf32> to vector<1x32xf32>
    %392 = vector.extract_strided_slice %388 {offsets = [0, 0], sizes = [1, 32], strides = [1, 1]} : vector<1x96xf32> to vector<1x32xf32>
    %393 = arith.addf %391, %392 : vector<1x32xf32>
    %394 = arith.negf %393 : vector<1x32xf32>
    %395 = math.exp %394 : vector<1x32xf32>
    %cst_90 = arith.constant 1.000000e+00 : f32
    %396 = vector.broadcast %cst_90 : f32 to vector<1x32xf32>
    %397 = arith.addf %396, %395 : vector<1x32xf32>
    %398 = arith.divf %396, %397 : vector<1x32xf32>
    %399 = vector.extract_strided_slice %390 {offsets = [0, 32], sizes = [1, 32], strides = [1, 1]} : vector<1x96xf32> to vector<1x32xf32>
    %400 = vector.extract_strided_slice %388 {offsets = [0, 32], sizes = [1, 32], strides = [1, 1]} : vector<1x96xf32> to vector<1x32xf32>
    %401 = arith.addf %399, %400 : vector<1x32xf32>
    %402 = arith.negf %401 : vector<1x32xf32>
    %403 = math.exp %402 : vector<1x32xf32>
    %cst_91 = arith.constant 1.000000e+00 : f32
    %404 = vector.broadcast %cst_91 : f32 to vector<1x32xf32>
    %405 = arith.addf %404, %403 : vector<1x32xf32>
    %406 = arith.divf %404, %405 : vector<1x32xf32>
    %407 = vector.extract_strided_slice %390 {offsets = [0, 64], sizes = [1, 32], strides = [1, 1]} : vector<1x96xf32> to vector<1x32xf32>
    %408 = vector.extract_strided_slice %388 {offsets = [0, 64], sizes = [1, 32], strides = [1, 1]} : vector<1x96xf32> to vector<1x32xf32>
    %409 = arith.addf %408, %3 : vector<1x32xf32>
    %410 = arith.mulf %398, %409 : vector<1x32xf32>
    %411 = arith.addf %407, %410 : vector<1x32xf32>
    %412 = math.tanh %411 : vector<1x32xf32>
    %cst_92 = arith.constant 1.000000e+00 : f32
    %413 = vector.broadcast %cst_92 : f32 to vector<1x32xf32>
    %414 = arith.subf %413, %406 : vector<1x32xf32>
    %415 = arith.mulf %414, %412 : vector<1x32xf32>
    %416 = arith.mulf %406, %355 : vector<1x32xf32>
    %417 = arith.addf %415, %416 : vector<1x32xf32>
    %cst_93 = arith.constant dense<0.000000e+00> : vector<1x96xf32>
    %418 = tpu.matmul %417, %1, %cst_93 {dimension_numbers = #tpu.dot_dimension_numbers<[1], [0], [0], [1], [0, 0, 1, 1], [], []>} : vector<1x32xf32>, vector<32x96xf32>, vector<1x96xf32> -> vector<1x96xf32>
    %419 = arith.addf %418, %2 : vector<1x96xf32>
    %420 = vector.extract_strided_slice %419 {offsets = [0, 0], sizes = [1, 32], strides = [1, 1]} : vector<1x96xf32> to vector<1x32xf32>
    %421 = vector.extract_strided_slice %389 {offsets = [0, 0], sizes = [1, 32], strides = [1, 1]} : vector<1x96xf32> to vector<1x32xf32>
    %422 = arith.addf %420, %421 : vector<1x32xf32>
    %423 = arith.negf %422 : vector<1x32xf32>
    %424 = math.exp %423 : vector<1x32xf32>
    %cst_94 = arith.constant 1.000000e+00 : f32
    %425 = vector.broadcast %cst_94 : f32 to vector<1x32xf32>
    %426 = arith.addf %425, %424 : vector<1x32xf32>
    %427 = arith.divf %425, %426 : vector<1x32xf32>
    %428 = vector.extract_strided_slice %419 {offsets = [0, 32], sizes = [1, 32], strides = [1, 1]} : vector<1x96xf32> to vector<1x32xf32>
    %429 = vector.extract_strided_slice %389 {offsets = [0, 32], sizes = [1, 32], strides = [1, 1]} : vector<1x96xf32> to vector<1x32xf32>
    %430 = arith.addf %428, %429 : vector<1x32xf32>
    %431 = arith.negf %430 : vector<1x32xf32>
    %432 = math.exp %431 : vector<1x32xf32>
    %cst_95 = arith.constant 1.000000e+00 : f32
    %433 = vector.broadcast %cst_95 : f32 to vector<1x32xf32>
    %434 = arith.addf %433, %432 : vector<1x32xf32>
    %435 = arith.divf %433, %434 : vector<1x32xf32>
    %436 = vector.extract_strided_slice %419 {offsets = [0, 64], sizes = [1, 32], strides = [1, 1]} : vector<1x96xf32> to vector<1x32xf32>
    %437 = vector.extract_strided_slice %389 {offsets = [0, 64], sizes = [1, 32], strides = [1, 1]} : vector<1x96xf32> to vector<1x32xf32>
    %438 = arith.addf %437, %4 : vector<1x32xf32>
    %439 = arith.mulf %427, %438 : vector<1x32xf32>
    %440 = arith.addf %436, %439 : vector<1x32xf32>
    %441 = math.tanh %440 : vector<1x32xf32>
    %cst_96 = arith.constant 1.000000e+00 : f32
    %442 = vector.broadcast %cst_96 : f32 to vector<1x32xf32>
    %443 = arith.subf %442, %435 : vector<1x32xf32>
    %444 = arith.mulf %443, %441 : vector<1x32xf32>
    %445 = arith.mulf %435, %384 : vector<1x32xf32>
    %446 = arith.addf %444, %445 : vector<1x32xf32>
    %c6_97 = arith.constant 6 : index
    %c0_98 = arith.constant 0 : index
    %447 = vector.load %arg14[%c6_97, %c0_98] : memref<8x32xf32, #tpu.memory_space<vmem>>, vector<1x32xf32>
    tpu.vector_store %arg14[%c6_97, %c0_98], %446 {strides = array<i32>} : memref<8x32xf32, #tpu.memory_space<vmem>>, vector<1x32xf32>,
    %448 = tpu.concatenate %417, %446 in 1 : vector<1x32xf32>, vector<1x32xf32> -> vector<1x64xf32>
    %cst_99 = arith.constant dense<0.000000e+00> : vector<1x192xf32>
    %449 = tpu.matmul %448, %0, %cst_99 {dimension_numbers = #tpu.dot_dimension_numbers<[1], [0], [0], [1], [0, 0, 1, 1], [], []>} : vector<1x64xf32>, vector<64x192xf32>, vector<1x192xf32> -> vector<1x192xf32>
    %450 = vector.extract_strided_slice %449 {offsets = [0, 0], sizes = [1, 96], strides = [1, 1]} : vector<1x192xf32> to vector<1x96xf32>
    %451 = vector.extract_strided_slice %449 {offsets = [0, 96], sizes = [1, 96], strides = [1, 1]} : vector<1x192xf32> to vector<1x96xf32>
    %c7 = arith.constant 7 : index
    %c0_100 = arith.constant 0 : index
    %452 = vector.load %arg13[%c7, %c0_100] : memref<8x96xf32, #tpu.memory_space<vmem>>, vector<1x96xf32>
    %453 = vector.extract_strided_slice %452 {offsets = [0, 0], sizes = [1, 32], strides = [1, 1]} : vector<1x96xf32> to vector<1x32xf32>
    %454 = vector.extract_strided_slice %450 {offsets = [0, 0], sizes = [1, 32], strides = [1, 1]} : vector<1x96xf32> to vector<1x32xf32>
    %455 = arith.addf %453, %454 : vector<1x32xf32>
    %456 = arith.negf %455 : vector<1x32xf32>
    %457 = math.exp %456 : vector<1x32xf32>
    %cst_101 = arith.constant 1.000000e+00 : f32
    %458 = vector.broadcast %cst_101 : f32 to vector<1x32xf32>
    %459 = arith.addf %458, %457 : vector<1x32xf32>
    %460 = arith.divf %458, %459 : vector<1x32xf32>
    %461 = vector.extract_strided_slice %452 {offsets = [0, 32], sizes = [1, 32], strides = [1, 1]} : vector<1x96xf32> to vector<1x32xf32>
    %462 = vector.extract_strided_slice %450 {offsets = [0, 32], sizes = [1, 32], strides = [1, 1]} : vector<1x96xf32> to vector<1x32xf32>
    %463 = arith.addf %461, %462 : vector<1x32xf32>
    %464 = arith.negf %463 : vector<1x32xf32>
    %465 = math.exp %464 : vector<1x32xf32>
    %cst_102 = arith.constant 1.000000e+00 : f32
    %466 = vector.broadcast %cst_102 : f32 to vector<1x32xf32>
    %467 = arith.addf %466, %465 : vector<1x32xf32>
    %468 = arith.divf %466, %467 : vector<1x32xf32>
    %469 = vector.extract_strided_slice %452 {offsets = [0, 64], sizes = [1, 32], strides = [1, 1]} : vector<1x96xf32> to vector<1x32xf32>
    %470 = vector.extract_strided_slice %450 {offsets = [0, 64], sizes = [1, 32], strides = [1, 1]} : vector<1x96xf32> to vector<1x32xf32>
    %471 = arith.addf %470, %3 : vector<1x32xf32>
    %472 = arith.mulf %460, %471 : vector<1x32xf32>
    %473 = arith.addf %469, %472 : vector<1x32xf32>
    %474 = math.tanh %473 : vector<1x32xf32>
    %cst_103 = arith.constant 1.000000e+00 : f32
    %475 = vector.broadcast %cst_103 : f32 to vector<1x32xf32>
    %476 = arith.subf %475, %468 : vector<1x32xf32>
    %477 = arith.mulf %476, %474 : vector<1x32xf32>
    %478 = arith.mulf %468, %417 : vector<1x32xf32>
    %479 = arith.addf %477, %478 : vector<1x32xf32>
    %cst_104 = arith.constant dense<0.000000e+00> : vector<1x96xf32>
    %480 = tpu.matmul %479, %1, %cst_104 {dimension_numbers = #tpu.dot_dimension_numbers<[1], [0], [0], [1], [0, 0, 1, 1], [], []>} : vector<1x32xf32>, vector<32x96xf32>, vector<1x96xf32> -> vector<1x96xf32>
    %481 = arith.addf %480, %2 : vector<1x96xf32>
    %482 = vector.extract_strided_slice %481 {offsets = [0, 0], sizes = [1, 32], strides = [1, 1]} : vector<1x96xf32> to vector<1x32xf32>
    %483 = vector.extract_strided_slice %451 {offsets = [0, 0], sizes = [1, 32], strides = [1, 1]} : vector<1x96xf32> to vector<1x32xf32>
    %484 = arith.addf %482, %483 : vector<1x32xf32>
    %485 = arith.negf %484 : vector<1x32xf32>
    %486 = math.exp %485 : vector<1x32xf32>
    %cst_105 = arith.constant 1.000000e+00 : f32
    %487 = vector.broadcast %cst_105 : f32 to vector<1x32xf32>
    %488 = arith.addf %487, %486 : vector<1x32xf32>
    %489 = arith.divf %487, %488 : vector<1x32xf32>
    %490 = vector.extract_strided_slice %481 {offsets = [0, 32], sizes = [1, 32], strides = [1, 1]} : vector<1x96xf32> to vector<1x32xf32>
    %491 = vector.extract_strided_slice %451 {offsets = [0, 32], sizes = [1, 32], strides = [1, 1]} : vector<1x96xf32> to vector<1x32xf32>
    %492 = arith.addf %490, %491 : vector<1x32xf32>
    %493 = arith.negf %492 : vector<1x32xf32>
    %494 = math.exp %493 : vector<1x32xf32>
    %cst_106 = arith.constant 1.000000e+00 : f32
    %495 = vector.broadcast %cst_106 : f32 to vector<1x32xf32>
    %496 = arith.addf %495, %494 : vector<1x32xf32>
    %497 = arith.divf %495, %496 : vector<1x32xf32>
    %498 = vector.extract_strided_slice %481 {offsets = [0, 64], sizes = [1, 32], strides = [1, 1]} : vector<1x96xf32> to vector<1x32xf32>
    %499 = vector.extract_strided_slice %451 {offsets = [0, 64], sizes = [1, 32], strides = [1, 1]} : vector<1x96xf32> to vector<1x32xf32>
    %500 = arith.addf %499, %4 : vector<1x32xf32>
    %501 = arith.mulf %489, %500 : vector<1x32xf32>
    %502 = arith.addf %498, %501 : vector<1x32xf32>
    %503 = math.tanh %502 : vector<1x32xf32>
    %cst_107 = arith.constant 1.000000e+00 : f32
    %504 = vector.broadcast %cst_107 : f32 to vector<1x32xf32>
    %505 = arith.subf %504, %497 : vector<1x32xf32>
    %506 = arith.mulf %505, %503 : vector<1x32xf32>
    %507 = arith.mulf %497, %446 : vector<1x32xf32>
    %508 = arith.addf %506, %507 : vector<1x32xf32>
    %c7_108 = arith.constant 7 : index
    %c0_109 = arith.constant 0 : index
    %509 = vector.load %arg14[%c7_108, %c0_109] : memref<8x32xf32, #tpu.memory_space<vmem>>, vector<1x32xf32>
    tpu.vector_store %arg14[%c7_108, %c0_109], %508 {strides = array<i32>} : memref<8x32xf32, #tpu.memory_space<vmem>>, vector<1x32xf32>,
    %c0_110 = arith.constant 0 : index
    %c0_111 = arith.constant 0 : index
    %510 = vector.load %arg12[%c0_110, %c0_111] : memref<2x32xf32, #tpu.memory_space<vmem>>, vector<1x32xf32>
    tpu.vector_store %arg12[%c0_110, %c0_111], %479 {strides = array<i32>} : memref<2x32xf32, #tpu.memory_space<vmem>>, vector<1x32xf32>,
    %c1_112 = arith.constant 1 : index
    %c0_113 = arith.constant 0 : index
    %511 = vector.load %arg12[%c1_112, %c0_113] : memref<2x32xf32, #tpu.memory_space<vmem>>, vector<1x32xf32>
    tpu.vector_store %arg12[%c1_112, %c0_113], %508 {strides = array<i32>} : memref<2x32xf32, #tpu.memory_space<vmem>>, vector<1x32xf32>,
    %c0_114 = arith.constant 0 : index
    %c0_115 = arith.constant 0 : index
    %512 = vector.load %arg14[%c0_114, %c0_115] : memref<8x32xf32, #tpu.memory_space<vmem>>, vector<8x32xf32>
    %cst_116 = arith.constant 0.000000e+00 : f32
    %513 = vector.broadcast %cst_116 : f32 to vector<8x32xf32>
    %514 = arith.maximumf %512, %513 : vector<8x32xf32>
    %c0_117 = arith.constant 0 : index
    %c0_118 = arith.constant 0 : index
    %515 = vector.load %arg9[%c0_117, %c0_118] : memref<32x2xf32, #tpu.memory_space<vmem>>, vector<32x2xf32>
    %cst_119 = arith.constant dense<0.000000e+00> : vector<8x2xf32>
    %516 = tpu.matmul %514, %515, %cst_119 {dimension_numbers = #tpu.dot_dimension_numbers<[1], [0], [0], [1], [0, 0, 1, 1], [], []>} : vector<8x32xf32>, vector<32x2xf32>, vector<8x2xf32> -> vector<8x2xf32>
    %c0_120 = arith.constant 0 : index
    %c0_121 = arith.constant 0 : index
    %517 = vector.load %arg10[%c0_120, %c0_121] : memref<1x2xf32, #tpu.memory_space<vmem>>, vector<1x2xf32>
    %518 = vector.broadcast %517 : vector<1x2xf32> to vector<8x2xf32>
    %519 = arith.addf %516, %518 : vector<8x2xf32>
    %520 = arith.negf %519 : vector<8x2xf32>
    %521 = math.exp %520 : vector<8x2xf32>
    %cst_122 = arith.constant 1.000000e+00 : f32
    %522 = vector.broadcast %cst_122 : f32 to vector<8x2xf32>
    %523 = arith.addf %522, %521 : vector<8x2xf32>
    %524 = arith.divf %522, %523 : vector<8x2xf32>
    %c0_123 = arith.constant 0 : index
    %c0_124 = arith.constant 0 : index
    %525 = vector.load %arg11[%c0_123, %c0_124] : memref<8x2xf32, #tpu.memory_space<vmem>>, vector<8x2xf32>
    tpu.vector_store %arg11[%c0_123, %c0_124], %524 {strides = array<i32>} : memref<8x2xf32, #tpu.memory_space<vmem>>, vector<8x2xf32>,
    return
  }
}

</mosaic_0001>

<bundles_post_ra>
// kernel: tpu_custom_call.1
= control target key start
LH: loop header
LB: loop body
LE: loop exit
PB: predicated region body
PF: predicated region fallthrough
CT: control target
= control target key end

     0   :  { %18 = vsyncpa [#allocation5], 0  ;;  %s3209_s0 = inlined_call_operand.vmem [shape: f32[8,4], index: 0, kind: input, shape index: {}]   ;;  %s3210_s1 = inlined_call_operand.vmem [shape: f32[2,32], index: 1, kind: input, shape index: {}]   ;;  %s3211_s2 = inlined_call_operand.vmem [shape: f32[4,96], index: 2, kind: input, shape index: {}]   ;;  %s3212_s3 = inlined_call_operand.hbm [shape: f32[64,192], index: 3, kind: input, shape index: {}]   ;;  %s3213_s4 = inlined_call_operand.vmem [shape: f32[1,96], index: 4, kind: input, shape index: {}]   ;;  %s3214_s5 = inlined_call_operand.vmem [shape: f32[1,32], index: 5, kind: input, shape index: {}]   ;;  %s3215_s6 = inlined_call_operand.vmem [shape: f32[32,96], index: 6, kind: input, shape index: {}]   ;;  %s3216_s7 = inlined_call_operand.vmem [shape: f32[1,96], index: 7, kind: input, shape index: {}]   ;;  %s3217_s8 = inlined_call_operand.vmem [shape: f32[1,32], index: 8, kind: input, shape index: {}]   ;;  %s3218_s9 = inlined_call_operand.vmem [shape: f32[32,2], index: 9, kind: input, shape index: {}]   ;;  %s3219_s10 = inlined_call_operand.vmem [shape: f32[1,2], index: 10, kind: input, shape index: {}]   ;;  %s3220_s11 = inlined_call_operand.vmem [shape: f32[8,2], index: 11, kind: output, shape index: {0}]   ;;  %s3221_s12 = inlined_call_operand.hbm [shape: f32[2,32], index: 12, kind: output, shape index: {1}]  }
   0x1   :  { %19 = vsyncpa [#allocation6], 0  ;;  %s2691_s21 = smov [#allocation4]   ;;  %s2643_s25 = scalar_lea.hbm %s3212_s3, 2048 }
   0x2   :  { %s31_s22 = sshll.u32 %s2691_s21, 4  ;;  %p2644_p0 = scmp.ne.s32.totalorder %s3212_s3, %s2643_s25  ;;  %s32_s22 = int_to_ptr.vmem [resolvable:$true] %s31_s22 }
   0x3   :  { %p2647_p1 = scmp.lt.u32.totalorder %s2643_s25, %s3212_s3 }
   0x5   :  { %p2649_p2 = pnand %p2647_p1, %p2644_p0 }
   0x7   :  { %2652 = shalt.err (!%p2649_p2)
}
   0x8   :  { %s2653_s30 = scalar_lea.vmem %s32_s22, 2048  ;;  %p2658_p4 = scmp.lt.s32.totalorder %s32_s22, %s32_s22 }
   0x9   :  { %p2654_p3 = scmp.ne.s32.totalorder %s32_s22, %s2653_s30  ;;  %p2659_p5 = scmp.lt.s32.totalorder %s2653_s30, %s2653_s30 }
   0xb   :  { %p2660_p6 = por %p2659_p5, %p2658_p4 }
   0xd   :  { %p2661_p7 = pnand %p2660_p6, %p2654_p3 }
   0xf   :  { %2664 = shalt.err (!%p2661_p7)
}
  0x10   :  { %s2692_s13 = smov 256   ;;  %s2693_s14 = smov 16  }
  0x11   :  { %37 = dma.hbm_to_vmem [thread:$0]  %s3212_s3, 2048, %s32_s22, [#allocation5], %s2692_s13, %s2692_s13, %s2693_s14  }
  0x12   :  { %2687 = dma.done.wait [#allocation5], 2048  }
  0x13   :  { %2688 = vsyncadd [#allocation5], 4294965248  ;;  %v2694_v0 = vmov 0.0   ;;  %vm2695_vm0 = vmmov 0   ;;  %v168_v1 = vld [vmem:[%s3210_s1 + $0x1] sm:$0x1] }
  0x14   :  { %2214 = vmatprep.subr.mxu0 %v2694_v0  ;;  %2216 = vmatprep.mubr.msk.f32.mxu0 %vm2695_vm0, %v2694_v0  ;;  %v56_v2 = vld [vmem:[#allocation4 + $0x8] sm:$0xff]  ;;  %v58_v3 = vld [vmem:[#allocation4 + $0x18] sm:$0xff]  ;;  %vm91_vm1 = vcmask 1043456   ;;  %s2696_s19 = smov 32   ;;  %v55_v5 = vld [vmem:[#allocation4] sm:$0xff]  ;;  %vm87_vm2 = vcmask 31744  }
  0x15   :  { %243 = vmatprep.mubr.f32.mxu1 %v2694_v0  ;;  %170 = vrot.lane.b32.xlu0 %v168_v1, %s2696_s19  ;;  %v2786_v4 = vpack.c.bf16 %v58_v3, %v56_v2  ;;  %v57_v6 = vld [vmem:[#allocation4 + $0x10] sm:$0xff]  ;;  %v60_v7 = vld [vmem:[#allocation4 + $0x28] sm:$0xff]  ;;  %v62_v9 = vld [vmem:[#allocation4 + $0x38] sm:$0xff]  ;;  %s2697_s23 = smov 64   ;;  %vm173_vm3 = vcmask 261120   ;;  %vm175_vm4 = vcmask 523264  }
  0x16   :  { %v2788_v8 = vpack.c.bf16 %v57_v6, %v55_v5  ;;  %v79_v10 = vld [vmem:[%s3211_s2] sm:$0xf]  ;;  %v59_v11 = vld [vmem:[#allocation4 + $0x20] sm:$0xff]  ;;  %v2794_v12 = vpack.c.bf16 %v62_v9, %v60_v7  ;;  %v64_v15 = vld [vmem:[#allocation4 + $0x48] sm:$0xff]  ;;  %vm165_vm5 = vcmask 785408   ;;  %v2698_v57 = vmov 0.0|0.0  }
  0x17   :  { %2319 = vmatprep.subr.bf16.mxu1 %v2786_v4  ;;  %2215 = vmatpush3.msk.msra.mxu0 %vm91_vm1, %v79_v10  ;;  %v61_v13 = vld [vmem:[#allocation4 + $0x30] sm:$0xff]  ;;  %v66_v17 = vld [vmem:[#allocation4 + $0x58] sm:$0xff]  ;;  %v63_v19 = vld [vmem:[#allocation4 + $0x40] sm:$0xff]  ;;  %s2699_s16 = smov 96   ;;  %vm419_vm6 = vcmask 253952  }
  0x18   :  { %v78_v14 = vld [vmem:[%s3209_s0] sm:$0xff]  ;;  %2321 = vmatpush1.bf16.msra.mxu1 %v2788_v8  ;;  %v2800_v16 = vpack.c.bf16 %v61_v13, %v59_v11  ;;  %v2803_v18 = vpack.c.bf16 %v66_v17, %v64_v15  ;;  %v68_v21 = vld [vmem:[#allocation4 + $0x68] sm:$0xff]  ;;  %v70_v22 = vld [vmem:[#allocation4 + $0x78] sm:$0xff]  ;;  %2334 = vmatprep.subr.bf16.mxu0 %v2698_v57 }
  0x19   :  { %2217 = vmatmul.mubr.msk.f32.vlgmr.msra.gmra.mrb[0].mxu0 %vm87_vm2, %v78_v14  ;;  %2323 = vmatprep.subr.bf16.mxu1 %v2794_v12  ;;  %v65_v20 = vld [vmem:[#allocation4 + $0x50] sm:$0xff]  ;;  %v2815_v25 = vpack.c.bf16 %v70_v22, %v68_v21  ;;  %v67_v26 = vld [vmem:[#allocation4 + $0x60] sm:$0xff]  ;;  %v72_v55 = vld [vmem:[%s3215_s6 + $0x8] sm:$0xff] }
  0x1a   :  { %2227 = vmatprep.mubr.msk.f32.mxu0 %vm2695_vm0, %v2694_v0  ;;  %v2124_v23 = vld [vmem:[%s3214_s5] ss:$0 sm:$0xff]  ;;  %v2812_v24 = vpack.c.bf16 %v65_v20, %v63_v19  ;;  %v73_v56 = vld [vmem:[%s3215_s6 + $0x10] sm:$0xff]  ;;  %v74_v59 = vld [vmem:[%s3215_s6 + $0x18] sm:$0xff] }
  0x1b   :  { %263 = vrot.lane.b32.xlu0 %v2124_v23, %s2697_s23  ;;  %v69_v27 = vld [vmem:[#allocation4 + $0x70] sm:$0xff]  ;;  %v2866_v60 = vpack.c.bf16 %v74_v59, %v73_v56 }
  0x1c   :  { %2325 = vmatpush1.bf16.msra.mxu1 %v2800_v16  ;;  %v2818_v28 = vpack.c.bf16 %v69_v27, %v67_v26  ;;  %v167_v29 = vld [vmem:[%s3210_s1] sm:$0x1] }
  0x1d   :  { %2327 = vmatprep.subr.bf16.mxu1 %v2803_v18  ;;  %v2119_v32 = vld [vmem:[%s3213_s4] ss:$0 sm:$0xff] }
  0x1e   :  { %v2128_v48 = vld [vmem:[%s3217_s8] ss:$0 sm:$0xff] }
  0x1f   :  { %v71_v54 = vld [vmem:[%s3215_s6] sm:$0xff] }
  0x20   :  { %2329 = vmatpush1.bf16.msra.mxu1 %v2812_v24  ;;  %v2858_v58 = vpack.c.bf16 %v72_v55, %v71_v54  ;;  %v2895_v6 = vld [vmem:[%s3216_s7] sm:$0x1] }
  0x21   :  { %2331 = vmatprep.subr.bf16.mxu1 %v2815_v25 }
  0x22   :  { %2336 = vmatpush3.bf16.msra.mxu0 %v2858_v58 }
  0x23   :  { %2337 = vmatprep.subr.bf16.mxu0 %v2698_v57 }
  0x24   :  { %2333 = vmatpush1.bf16.msra.mxu1 %v2818_v28 }
  0x25   :  { %2356 = vmatprep.subr.bf16.mxu1 %v2698_v57 }
  0x26   :  { %2339 = vmatpush3.bf16.msra.mxu0 %v2866_v60 }
  0x27   :  { %2341 = vmatprep.subr.bf16.mxu0 %v2786_v4 }
  0x87   :  { %v2825_v30 = vpop.permute.xlu0 %170 }
  0x88   :  { %v174_v31 = vsel %vm173_vm3, %v167_v29, %v2825_v30 }
  0x89   :  { %2122 = vmatmul.mubr.msk.f32.vlgmr.msra.gmra.mrb[0].mxu1 %vm175_vm4, %v174_v31 }
  0x8a   :  { %2238 = vmatprep.mubr.msk.f32.mxu1 %vm2695_vm0, %v2694_v0  ;;  %2358 = vmatpush3.bf16.msra.mxu1 %v2858_v58 }
  0x8b   :  { %2359 = vmatprep.subr.bf16.mxu1 %v2698_v57 }
  0x8d   :  { %v2835_v36 = vpop.permute.xlu0 %263 }
  0x8e   :  { %2361 = vmatpush3.bf16.msra.mxu1 %v2866_v60 }
  0x8f   :  { %2363 = vmatprep.subr.bf16.mxu1 %v2786_v4 }
  0xec   :  { %v161_v33 = vpop.f32.mrb[0].mxu0 }
  0xed   :  { %v162_v34 = vadd.f32 %v2119_v32, %v161_v33  ;;  %v2218_v35 = vpop.f32.mrb[1].mxu0 }
  0xef   :  { %166 = vst.msk [vmem:[#allocation2] sm:$0xff] %vm165_vm5, %v162_v34 }
  0xf6   :  { %v250_v40 = vld [vmem:[#allocation2] sm:$0x1] }
 0x15c   :  { %v245_v37 = vpop.f32.mrb[0].mxu1 }
 0x15d   :  { %v247_v38 = vpop.f32.mrb[1].mxu1  ;;  %v266_v39 = vadd.f32 %v2835_v36, %v245_v37  ;;  %v251_v41 = vadd.f32 %v250_v40, %v245_v37 }
 0x15f   :  { %268 = vrot.lane.b32.xlu1 %v266_v39, %s2697_s23  ;;  %v2123_v42 = vmul.f32 -1.442695, %v251_v41 }
 0x161   :  { %2510 = vpow2.f32 %v2123_v42 }
 0x16b   :  { %v2511_v43 = vpop.eup %2510 }
 0x16c   :  { %v255_v44 = vadd.f32 1.0, %v2511_v43 }
 0x16e   :  { %2512 = vrcp.f32 %v255_v44  ;;  %v497_v44 = vld [vmem:[#allocation2 + $0x1] sm:$0x1] }
 0x178   :  { %v2513_v45 = vpop.eup %2512 }
 0x179   :  { %v278_v62 = vsub.f32 1.0, %v2513_v45 }
 0x1d1   :  { %v269_v46 = vpop.permute.xlu1 %268 }
 0x1d2   :  { %v271_v47 = vmul.f32 %v2513_v45, %v269_v46 }
 0x1d4   :  { %273 = vrot.lane.b32.xlu1 %v271_v47, %s2697_s23 }
 0x1d8   :  { %285 = vrot.lane.b32.xlu1 %v167_v29, %s2696_s19 }
 0x1dc   :  { %392 = vrot.lane.b32.xlu1 %v2128_v48, %s2696_s19 }
 0x246   :  { %v274_v49 = vpop.permute.xlu1 %273 }
 0x247   :  { %v276_v50 = vadd.f32 %v274_v49, %v250_v40 }
 0x249   :  { %2514 = vtanh.f32 %v276_v50 }
 0x24a   :  { %v286_v51 = vpop.permute.xlu1 %285 }
 0x24b   :  { %v288_v1 = vmul.f32 %v2513_v45, %v286_v51 }
 0x24e   :  { %v2845_v52 = vpop.permute.xlu1 %392 }
 0x24f   :  { %v395_v53 = vadd.f32 %v2845_v52, %v247_v38 }
 0x251   :  { %397 = vrot.lane.b32.xlu1 %v395_v53, %s2699_s16 }
 0x253   :  { %v2515_v61 = vpop.eup %2514 }
 0x254   :  { %280 = vrot.lane.b32.xlu0 %v2515_v61, %s2699_s16 }
 0x255   :  { %377 = vrot.lane.b32.xlu1 %v247_v38, %s2696_s19 }
 0x2c3   :  { %v398_v20 = vpop.permute.xlu1 %397 }
 0x2c6   :  { %v281_v63 = vpop.permute.xlu0 %280 }
 0x2c7   :  { %v283_v2 = vmul.f32 %v281_v63, %v278_v62  ;;  %v378_v27 = vpop.permute.xlu1 %377 }
 0x2c9   :  { %v2877_v3 = vadd.f32 %v288_v1, %v283_v2 }
 0x2cb   :  { %291 = vrot.lane.b32.xlu0 %v2877_v3, %s2699_s16 }
 0x2cf   :  { %366 = vrot.lane.b32.xlu0 %v245_v37, %s2696_s19 }
 0x33d   :  { %v292_v5 = vpop.permute.xlu0 %291 }
 0x33e   :  { %2228 = vmatmul.mubr.msk.f32.vlgmr.msra.gmra.mrb[2].mxu0 %vm173_vm3, %v292_v5 }
 0x33f   :  { %2343 = vmatpush1.bf16.msra.mxu0 %v2788_v8  ;;  %490 = vmatprep.mubr.f32.mxu0 %v2694_v0 }
 0x340   :  { %2345 = vmatprep.subr.bf16.mxu0 %v2794_v12 }
 0x341   :  { %v367_v11 = vpop.permute.xlu0 %366 }
 0x343   :  { %2347 = vmatpush1.bf16.msra.mxu0 %v2800_v16 }
 0x344   :  { %2349 = vmatprep.subr.bf16.mxu0 %v2803_v18 }
 0x347   :  { %2351 = vmatpush1.bf16.msra.mxu0 %v2812_v24 }
 0x348   :  { %2353 = vmatprep.subr.bf16.mxu0 %v2815_v25 }
 0x34b   :  { %2355 = vmatpush1.bf16.msra.mxu0 %v2818_v28 }
 0x34c   :  { %2378 = vmatprep.subr.bf16.mxu0 %v2698_v57 }
 0x411   :  { %v361_v7 = vpop.f32.mrb[2].mxu0 }
 0x412   :  { %v362_v9 = vadd.f32 %v361_v7, %v2895_v6  ;;  %v2229_v10 = vpop.f32.mrb[3].mxu0 }
 0x414   :  { %v369_v13 = vadd.f32 %v367_v11, %v362_v9  ;;  %v380_v29 = vadd.f32 %v378_v27, %v362_v9 }
 0x416   :  { %v2126_v14 = vmul.f32 -1.442695, %v369_v13  ;;  %v2127_v31 = vmul.f32 -1.442695, %v380_v29 }
 0x418   :  { %2516 = vpow2.f32 %v2126_v14 }
 0x422   :  { %v2517_v15 = vpop.eup %2516 }
 0x423   :  { %v373_v17 = vadd.f32 1.0, %v2517_v15 }
 0x425   :  { %2518 = vrcp.f32 %v373_v17 }
 0x42f   :  { %v2519_v19 = vpop.eup %2518 }
 0x430   :  { %v400_v21 = vmul.f32 %v2519_v19, %v398_v20 }
 0x432   :  { %402 = vrot.lane.b32.xlu0 %v400_v21, %s2697_s23 }
 0x4a4   :  { %v403_v22 = vpop.permute.xlu0 %402 }
 0x4a5   :  { %v405_v23 = vadd.f32 %v403_v22, %v362_v9 }
 0x4a7   :  { %2520 = vtanh.f32 %v405_v23 }
 0x4a8   :  { %2522 = vpow2.f32 %v2127_v31 }
 0x4b1   :  { %v2521_v26 = vpop.eup %2520 }
 0x4b2   :  { %409 = vrot.lane.b32.xlu0 %v2521_v26, %s2699_s16  ;;  %v2523_v32 = vpop.eup %2522 }
 0x4b3   :  { %v384_v33 = vadd.f32 1.0, %v2523_v32 }
 0x4b5   :  { %2524 = vrcp.f32 %v384_v33 }
 0x4bf   :  { %v2525_v34 = vpop.eup %2524 }
 0x4c0   :  { %v407_v35 = vsub.f32 1.0, %v2525_v34  ;;  %v413_v39 = vmul.f32 %v2525_v34, %v2825_v30 }
 0x524   :  { %v410_v37 = vpop.permute.xlu0 %409 }
 0x525   :  { %v412_v38 = vmul.f32 %v410_v37, %v407_v35 }
 0x527   :  { %v2901_v40 = vadd.f32 %v413_v39, %v412_v38 }
 0x529   :  { %v422_v41 = vsel %vm173_vm3, %v292_v5, %v2901_v40 }
 0x52a   :  { %2129 = vmatmul.mubr.msk.f32.vlgmr.msra.gmra.mrb[4].mxu0 %vm175_vm4, %v422_v41 }
 0x52b   :  { %2380 = vmatpush3.bf16.msra.mxu0 %v2858_v58  ;;  %2249 = vmatprep.mubr.msk.f32.mxu0 %vm2695_vm0, %v2694_v0 }
 0x52c   :  { %2381 = vmatprep.subr.bf16.mxu0 %v2698_v57 }
 0x52f   :  { %2383 = vmatpush3.bf16.msra.mxu0 %v2866_v60 }
 0x530   :  { %2385 = vmatprep.subr.bf16.mxu0 %v2786_v4 }
 0x5fd   :  { %v492_v42 = vpop.f32.mrb[4].mxu0 }
 0x5fe   :  { %v505_v30 = vadd.f32 %v492_v42, %v2835_v36  ;;  %v494_v43 = vpop.f32.mrb[5].mxu0  ;;  %v498_v45 = vadd.f32 %v497_v44, %v492_v42 }
 0x5ff   :  { %v622_v1 = vadd.f32 %v494_v43, %v2845_v52 }
 0x600   :  { %507 = vrot.lane.b32.xlu1 %v505_v30, %s2697_s23  ;;  %v2130_v46 = vmul.f32 -1.442695, %v498_v45 }
 0x602   :  { %2526 = vpow2.f32 %v2130_v46 }
 0x60c   :  { %v2527_v47 = vpop.eup %2526 }
 0x60d   :  { %v502_v48 = vadd.f32 1.0, %v2527_v47 }
 0x60f   :  { %2528 = vrcp.f32 %v502_v48 }
 0x619   :  { %v2529_v49 = vpop.eup %2528 }
 0x61a   :  { %v517_v56 = vsub.f32 1.0, %v2529_v49  ;;  %v523_v61 = vmul.f32 %v2529_v49, %v2877_v3 }
 0x672   :  { %v508_v50 = vpop.permute.xlu1 %507 }
 0x673   :  { %v510_v51 = vmul.f32 %v2529_v49, %v508_v50 }
 0x675   :  { %512 = vrot.lane.b32.xlu0 %v510_v51, %s2697_s23 }
 0x6e7   :  { %v513_v53 = vpop.permute.xlu0 %512 }
 0x6e8   :  { %v515_v54 = vadd.f32 %v513_v53, %v497_v44 }
 0x6ea   :  { %2530 = vtanh.f32 %v515_v54 }
 0x6f4   :  { %v2531_v55 = vpop.eup %2530 }
 0x6f5   :  { %519 = vrot.lane.b32.xlu1 %v2531_v55, %s2699_s16 }
 0x6f9   :  { %601 = vrot.lane.b32.xlu1 %v492_v42, %s2696_s19 }
 0x767   :  { %v520_v59 = vpop.permute.xlu1 %519 }
 0x768   :  { %v522_v62 = vmul.f32 %v520_v59, %v517_v56 }
 0x76a   :  { %v2918_v63 = vadd.f32 %v523_v61, %v522_v62 }
 0x76b   :  { %v602_v9 = vpop.permute.xlu1 %601 }
 0x76c   :  { %526 = vrot.lane.b32.xlu0 %v2918_v63, %s2699_s16 }
 0x770   :  { %624 = vrot.lane.b32.xlu0 %v622_v1, %s2699_s16 }
 0x774   :  { %612 = vrot.lane.b32.xlu0 %v494_v43, %s2696_s19  ;;  %v723_v43 = vld [vmem:[#allocation2 + $0x2] sm:$0x1] }
 0x7de   :  { %v527_v2 = vpop.permute.xlu0 %526 }
 0x7df   :  { %2239 = vmatmul.mubr.msk.f32.vlgmr.msra.gmra.mrb[2].mxu1 %vm173_vm3, %v527_v2 }
 0x7e0   :  { %2365 = vmatpush1.bf16.msra.mxu1 %v2788_v8  ;;  %716 = vmatprep.mubr.f32.mxu1 %v2694_v0 }
 0x7e1   :  { %2367 = vmatprep.subr.bf16.mxu1 %v2794_v12 }
 0x7e2   :  { %v625_v17 = vpop.permute.xlu0 %624 }
 0x7e4   :  { %2369 = vmatpush1.bf16.msra.mxu1 %v2800_v16 }
 0x7e5   :  { %2371 = vmatprep.subr.bf16.mxu1 %v2803_v18 }
 0x7e6   :  { %v613_v23 = vpop.permute.xlu0 %612 }
 0x7e8   :  { %2373 = vmatpush1.bf16.msra.mxu1 %v2812_v24 }
 0x7e9   :  { %2375 = vmatprep.subr.bf16.mxu1 %v2815_v25 }
 0x7ec   :  { %2377 = vmatpush1.bf16.msra.mxu1 %v2818_v28 }
 0x7ed   :  { %2400 = vmatprep.subr.bf16.mxu1 %v2698_v57 }
 0x8b2   :  { %v596_v3 = vpop.f32.mrb[2].mxu1 }
 0x8b3   :  { %v597_v5 = vadd.f32 %v596_v3, %v2895_v6  ;;  %v2240_v7 = vpop.f32.mrb[3].mxu1 }
 0x8b5   :  { %v604_v10 = vadd.f32 %v602_v9, %v597_v5  ;;  %v615_v26 = vadd.f32 %v613_v23, %v597_v5 }
 0x8b7   :  { %v2132_v11 = vmul.f32 -1.442695, %v604_v10  ;;  %v2133_v27 = vmul.f32 -1.442695, %v615_v26 }
 0x8b9   :  { %2532 = vpow2.f32 %v2132_v11 }
 0x8c3   :  { %v2533_v13 = vpop.eup %2532 }
 0x8c4   :  { %v608_v14 = vadd.f32 1.0, %v2533_v13 }
 0x8c6   :  { %2534 = vrcp.f32 %v608_v14 }
 0x8d0   :  { %v2535_v15 = vpop.eup %2534 }
 0x8d1   :  { %v627_v19 = vmul.f32 %v2535_v15, %v625_v17 }
 0x8d3   :  { %629 = vrot.lane.b32.xlu1 %v627_v19, %s2697_s23 }
 0x945   :  { %v630_v20 = vpop.permute.xlu1 %629 }
 0x946   :  { %v632_v21 = vadd.f32 %v630_v20, %v597_v5 }
 0x948   :  { %2536 = vtanh.f32 %v632_v21 }
 0x949   :  { %2538 = vpow2.f32 %v2133_v27 }
 0x952   :  { %v2537_v22 = vpop.eup %2536 }
 0x953   :  { %636 = vrot.lane.b32.xlu1 %v2537_v22, %s2699_s16  ;;  %v2539_v29 = vpop.eup %2538 }
 0x954   :  { %v619_v31 = vadd.f32 1.0, %v2539_v29 }
 0x956   :  { %2540 = vrcp.f32 %v619_v31 }
 0x960   :  { %v2541_v32 = vpop.eup %2540 }
 0x961   :  { %v634_v33 = vsub.f32 1.0, %v2541_v32  ;;  %v640_v37 = vmul.f32 %v2541_v32, %v2901_v40 }
 0x9c5   :  { %v637_v34 = vpop.permute.xlu1 %636 }
 0x9c6   :  { %v639_v35 = vmul.f32 %v637_v34, %v634_v33 }
 0x9c8   :  { %v2939_v38 = vadd.f32 %v640_v37, %v639_v35 }
 0x9ca   :  { %v648_v39 = vsel %vm173_vm3, %v527_v2, %v2939_v38 }
 0x9cb   :  { %2134 = vmatmul.mubr.msk.f32.vlgmr.msra.gmra.mrb[4].mxu1 %vm175_vm4, %v648_v39 }
 0x9cc   :  { %2402 = vmatpush3.bf16.msra.mxu1 %v2858_v58  ;;  %2260 = vmatprep.mubr.msk.f32.mxu1 %vm2695_vm0, %v2694_v0 }
 0x9cd   :  { %2403 = vmatprep.subr.bf16.mxu1 %v2698_v57 }
 0x9d0   :  { %2405 = vmatpush3.bf16.msra.mxu1 %v2866_v60 }
 0x9d1   :  { %2407 = vmatprep.subr.bf16.mxu1 %v2786_v4 }
 0xa9e   :  { %v718_v41 = vpop.f32.mrb[4].mxu1 }
 0xa9f   :  { %v731_v42 = vadd.f32 %v718_v41, %v2835_v36  ;;  %v720_v30 = vpop.f32.mrb[5].mxu1  ;;  %v724_v44 = vadd.f32 %v723_v43, %v718_v41 }
 0xaa0   :  { %v848_v1 = vadd.f32 %v720_v30, %v2845_v52 }
 0xaa1   :  { %733 = vrot.lane.b32.xlu0 %v731_v42, %s2697_s23  ;;  %v2135_v45 = vmul.f32 -1.442695, %v724_v44 }
 0xaa3   :  { %2542 = vpow2.f32 %v2135_v45 }
 0xaad   :  { %v2543_v46 = vpop.eup %2542 }
 0xaae   :  { %v728_v47 = vadd.f32 1.0, %v2543_v46 }
 0xab0   :  { %2544 = vrcp.f32 %v728_v47 }
 0xaba   :  { %v2545_v48 = vpop.eup %2544 }
 0xabb   :  { %v743_v55 = vsub.f32 1.0, %v2545_v48  ;;  %v749_v59 = vmul.f32 %v2545_v48, %v2918_v63 }
 0xb13   :  { %v734_v49 = vpop.permute.xlu0 %733 }
 0xb14   :  { %v736_v50 = vmul.f32 %v2545_v48, %v734_v49 }
 0xb16   :  { %738 = vrot.lane.b32.xlu1 %v736_v50, %s2697_s23 }
 0xb88   :  { %v739_v51 = vpop.permute.xlu1 %738 }
 0xb89   :  { %v741_v53 = vadd.f32 %v739_v51, %v723_v43  ;;  %v949_v43 = vld [vmem:[#allocation2 + $0x3] sm:$0x1] }
 0xb8b   :  { %2546 = vtanh.f32 %v741_v53 }
 0xb95   :  { %v2547_v54 = vpop.eup %2546 }
 0xb96   :  { %745 = vrot.lane.b32.xlu0 %v2547_v54, %s2699_s16 }
 0xb9a   :  { %827 = vrot.lane.b32.xlu0 %v718_v41, %s2696_s19 }
 0xc08   :  { %v746_v56 = vpop.permute.xlu0 %745 }
 0xc09   :  { %v748_v61 = vmul.f32 %v746_v56, %v743_v55 }
 0xc0b   :  { %v2956_v62 = vadd.f32 %v749_v59, %v748_v61 }
 0xc0c   :  { %v828_v7 = vpop.permute.xlu0 %827 }
 0xc0d   :  { %752 = vrot.lane.b32.xlu1 %v2956_v62, %s2699_s16 }
 0xc11   :  { %850 = vrot.lane.b32.xlu1 %v848_v1, %s2699_s16 }
 0xc15   :  { %838 = vrot.lane.b32.xlu1 %v720_v30, %s2696_s19 }
 0xc7f   :  { %v753_v2 = vpop.permute.xlu1 %752 }
 0xc80   :  { %2250 = vmatmul.mubr.msk.f32.vlgmr.msra.gmra.mrb[6].mxu0 %vm173_vm3, %v753_v2 }
 0xc81   :  { %2387 = vmatpush1.bf16.msra.mxu0 %v2788_v8  ;;  %942 = vmatprep.mubr.f32.mxu0 %v2694_v0 }
 0xc82   :  { %2389 = vmatprep.subr.bf16.mxu0 %v2794_v12 }
 0xc83   :  { %v851_v15 = vpop.permute.xlu1 %850 }
 0xc85   :  { %2391 = vmatpush1.bf16.msra.mxu0 %v2800_v16 }
 0xc86   :  { %2393 = vmatprep.subr.bf16.mxu0 %v2803_v18 }
 0xc87   :  { %v839_v22 = vpop.permute.xlu1 %838 }
 0xc89   :  { %2395 = vmatpush1.bf16.msra.mxu0 %v2812_v24 }
 0xc8a   :  { %2397 = vmatprep.subr.bf16.mxu0 %v2815_v25 }
 0xc8d   :  { %2399 = vmatpush1.bf16.msra.mxu0 %v2818_v28 }
 0xc8e   :  { %2422 = vmatprep.subr.bf16.mxu0 %v2698_v57 }
 0xd53   :  { %v822_v63 = vpop.f32.mrb[6].mxu0 }
 0xd54   :  { %v823_v3 = vadd.f32 %v822_v63, %v2895_v6  ;;  %v2251_v5 = vpop.f32.mrb[7].mxu0 }
 0xd56   :  { %v830_v9 = vadd.f32 %v828_v7, %v823_v3  ;;  %v841_v23 = vadd.f32 %v839_v22, %v823_v3 }
 0xd58   :  { %v2137_v10 = vmul.f32 -1.442695, %v830_v9  ;;  %v2138_v26 = vmul.f32 -1.442695, %v841_v23 }
 0xd5a   :  { %2548 = vpow2.f32 %v2137_v10 }
 0xd64   :  { %v2549_v11 = vpop.eup %2548 }
 0xd65   :  { %v834_v13 = vadd.f32 1.0, %v2549_v11 }
 0xd67   :  { %2550 = vrcp.f32 %v834_v13 }
 0xd71   :  { %v2551_v14 = vpop.eup %2550 }
 0xd72   :  { %v853_v17 = vmul.f32 %v2551_v14, %v851_v15 }
 0xd74   :  { %855 = vrot.lane.b32.xlu0 %v853_v17, %s2697_s23 }
 0xde6   :  { %v856_v19 = vpop.permute.xlu0 %855 }
 0xde7   :  { %v858_v20 = vadd.f32 %v856_v19, %v823_v3 }
 0xde9   :  { %2552 = vtanh.f32 %v858_v20 }
 0xdea   :  { %2554 = vpow2.f32 %v2138_v26 }
 0xdf3   :  { %v2553_v21 = vpop.eup %2552 }
 0xdf4   :  { %862 = vrot.lane.b32.xlu0 %v2553_v21, %s2699_s16  ;;  %v2555_v27 = vpop.eup %2554 }
 0xdf5   :  { %v845_v29 = vadd.f32 1.0, %v2555_v27 }
 0xdf7   :  { %2556 = vrcp.f32 %v845_v29 }
 0xe01   :  { %v2557_v31 = vpop.eup %2556 }
 0xe02   :  { %v860_v32 = vsub.f32 1.0, %v2557_v31  ;;  %v866_v35 = vmul.f32 %v2557_v31, %v2939_v38 }
 0xe66   :  { %v863_v33 = vpop.permute.xlu0 %862 }
 0xe67   :  { %v865_v34 = vmul.f32 %v863_v33, %v860_v32 }
 0xe69   :  { %v2977_v37 = vadd.f32 %v866_v35, %v865_v34 }
 0xe6b   :  { %v874_v39 = vsel %vm173_vm3, %v753_v2, %v2977_v37 }
 0xe6c   :  { %2139 = vmatmul.mubr.msk.f32.vlgmr.msra.gmra.mrb[8].mxu0 %vm175_vm4, %v874_v39 }
 0xe6d   :  { %2424 = vmatpush3.bf16.msra.mxu0 %v2858_v58  ;;  %2271 = vmatprep.mubr.msk.f32.mxu0 %vm2695_vm0, %v2694_v0 }
 0xe6e   :  { %2425 = vmatprep.subr.bf16.mxu0 %v2698_v57 }
 0xe71   :  { %2427 = vmatpush3.bf16.msra.mxu0 %v2866_v60 }
 0xe72   :  { %2429 = vmatprep.subr.bf16.mxu0 %v2786_v4 }
 0xf3f   :  { %v944_v41 = vpop.f32.mrb[8].mxu0 }
 0xf40   :  { %v957_v42 = vadd.f32 %v944_v41, %v2835_v36  ;;  %v946_v30 = vpop.f32.mrb[9].mxu0  ;;  %v950_v44 = vadd.f32 %v949_v43, %v944_v41 }
 0xf41   :  { %v1074_v2 = vadd.f32 %v946_v30, %v2845_v52 }
 0xf42   :  { %959 = vrot.lane.b32.xlu1 %v957_v42, %s2697_s23  ;;  %v2140_v45 = vmul.f32 -1.442695, %v950_v44  ;;  %v1175_v44 = vld [vmem:[#allocation2 + $0x4] sm:$0x1] }
 0xf44   :  { %2558 = vpow2.f32 %v2140_v45 }
 0xf4e   :  { %v2559_v46 = vpop.eup %2558 }
 0xf4f   :  { %v954_v47 = vadd.f32 1.0, %v2559_v46 }
 0xf51   :  { %2560 = vrcp.f32 %v954_v47 }
 0xf5b   :  { %v2561_v48 = vpop.eup %2560 }
 0xf5c   :  { %v969_v55 = vsub.f32 1.0, %v2561_v48  ;;  %v975_v59 = vmul.f32 %v2561_v48, %v2956_v62 }
 0xfb4   :  { %v960_v49 = vpop.permute.xlu1 %959 }
 0xfb5   :  { %v962_v50 = vmul.f32 %v2561_v48, %v960_v49 }
 0xfb7   :  { %964 = vrot.lane.b32.xlu0 %v962_v50, %s2697_s23 }
0x1029   :  { %v965_v51 = vpop.permute.xlu0 %964 }
0x102a   :  { %v967_v53 = vadd.f32 %v965_v51, %v949_v43 }
0x102c   :  { %2562 = vtanh.f32 %v967_v53 }
0x1036   :  { %v2563_v54 = vpop.eup %2562 }
0x1037   :  { %971 = vrot.lane.b32.xlu1 %v2563_v54, %s2699_s16 }
0x103b   :  { %1053 = vrot.lane.b32.xlu1 %v944_v41, %s2696_s19 }
0x10a9   :  { %v972_v56 = vpop.permute.xlu1 %971 }
0x10aa   :  { %v974_v61 = vmul.f32 %v972_v56, %v969_v55 }
0x10ac   :  { %v2994_v1 = vadd.f32 %v975_v59, %v974_v61 }
0x10ad   :  { %v1054_v7 = vpop.permute.xlu1 %1053 }
0x10ae   :  { %978 = vrot.lane.b32.xlu0 %v2994_v1, %s2699_s16 }
0x10b2   :  { %1076 = vrot.lane.b32.xlu0 %v1074_v2, %s2699_s16 }
0x10b6   :  { %1064 = vrot.lane.b32.xlu0 %v946_v30, %s2696_s19 }
0x1120   :  { %v979_v63 = vpop.permute.xlu0 %978 }
0x1121   :  { %2261 = vmatmul.mubr.msk.f32.vlgmr.msra.gmra.mrb[6].mxu1 %vm173_vm3, %v979_v63 }
0x1122   :  { %2409 = vmatpush1.bf16.msra.mxu1 %v2788_v8  ;;  %1168 = vmatprep.mubr.f32.mxu1 %v2694_v0 }
0x1123   :  { %2411 = vmatprep.subr.bf16.mxu1 %v2794_v12 }
0x1124   :  { %v1077_v15 = vpop.permute.xlu0 %1076 }
0x1126   :  { %2413 = vmatpush1.bf16.msra.mxu1 %v2800_v16 }
0x1127   :  { %2415 = vmatprep.subr.bf16.mxu1 %v2803_v18 }
0x1128   :  { %v1065_v22 = vpop.permute.xlu0 %1064 }
0x112a   :  { %2417 = vmatpush1.bf16.msra.mxu1 %v2812_v24 }
0x112b   :  { %2419 = vmatprep.subr.bf16.mxu1 %v2815_v25 }
0x112e   :  { %2421 = vmatpush1.bf16.msra.mxu1 %v2818_v28 }
0x112f   :  { %2444 = vmatprep.subr.bf16.mxu1 %v2698_v57 }
0x11f4   :  { %v1048_v62 = vpop.f32.mrb[6].mxu1 }
0x11f5   :  { %v1049_v3 = vadd.f32 %v1048_v62, %v2895_v6  ;;  %v2262_v5 = vpop.f32.mrb[7].mxu1 }
0x11f7   :  { %v1056_v9 = vadd.f32 %v1054_v7, %v1049_v3  ;;  %v1067_v23 = vadd.f32 %v1065_v22, %v1049_v3 }
0x11f9   :  { %v2142_v10 = vmul.f32 -1.442695, %v1056_v9  ;;  %v2143_v26 = vmul.f32 -1.442695, %v1067_v23 }
0x11fb   :  { %2564 = vpow2.f32 %v2142_v10 }
0x1205   :  { %v2565_v11 = vpop.eup %2564 }
0x1206   :  { %v1060_v13 = vadd.f32 1.0, %v2565_v11 }
0x1208   :  { %2566 = vrcp.f32 %v1060_v13 }
0x1212   :  { %v2567_v14 = vpop.eup %2566 }
0x1213   :  { %v1079_v17 = vmul.f32 %v2567_v14, %v1077_v15 }
0x1215   :  { %1081 = vrot.lane.b32.xlu1 %v1079_v17, %s2697_s23 }
0x1287   :  { %v1082_v19 = vpop.permute.xlu1 %1081 }
0x1288   :  { %v1084_v20 = vadd.f32 %v1082_v19, %v1049_v3 }
0x128a   :  { %2568 = vtanh.f32 %v1084_v20 }
0x128b   :  { %2570 = vpow2.f32 %v2143_v26 }
0x1294   :  { %v2569_v21 = vpop.eup %2568 }
0x1295   :  { %1088 = vrot.lane.b32.xlu1 %v2569_v21, %s2699_s16  ;;  %v2571_v27 = vpop.eup %2570 }
0x1296   :  { %v1071_v29 = vadd.f32 1.0, %v2571_v27 }
0x1298   :  { %2572 = vrcp.f32 %v1071_v29 }
0x12a2   :  { %v2573_v31 = vpop.eup %2572 }
0x12a3   :  { %v1086_v32 = vsub.f32 1.0, %v2573_v31  ;;  %v1092_v35 = vmul.f32 %v2573_v31, %v2977_v37 }
0x1307   :  { %v1089_v33 = vpop.permute.xlu1 %1088 }
0x1308   :  { %v1091_v34 = vmul.f32 %v1089_v33, %v1086_v32 }
0x130a   :  { %v3015_v39 = vadd.f32 %v1092_v35, %v1091_v34 }
0x130c   :  { %v1100_v41 = vsel %vm173_vm3, %v979_v63, %v3015_v39 }
0x130d   :  { %2144 = vmatmul.mubr.msk.f32.vlgmr.msra.gmra.mrb[8].mxu1 %vm175_vm4, %v1100_v41 }
0x130e   :  { %2446 = vmatpush3.bf16.msra.mxu1 %v2858_v58  ;;  %2282 = vmatprep.mubr.msk.f32.mxu1 %vm2695_vm0, %v2694_v0 }
0x130f   :  { %2447 = vmatprep.subr.bf16.mxu1 %v2698_v57 }
0x1312   :  { %2449 = vmatpush3.bf16.msra.mxu1 %v2866_v60 }
0x1313   :  { %2451 = vmatprep.subr.bf16.mxu1 %v2786_v4 }
0x13e0   :  { %v1170_v42 = vpop.f32.mrb[8].mxu1 }
0x13e1   :  { %v1183_v30 = vadd.f32 %v1170_v42, %v2835_v36  ;;  %v1172_v43 = vpop.f32.mrb[9].mxu1  ;;  %v1176_v45 = vadd.f32 %v1175_v44, %v1170_v42 }
0x13e2   :  { %v1300_v62 = vadd.f32 %v1172_v43, %v2845_v52 }
0x13e3   :  { %1185 = vrot.lane.b32.xlu0 %v1183_v30, %s2697_s23  ;;  %v2145_v46 = vmul.f32 -1.442695, %v1176_v45 }
0x13e5   :  { %2574 = vpow2.f32 %v2145_v46  ;;  %v1401_v46 = vld [vmem:[#allocation2 + $0x5] sm:$0x1] }
0x13ef   :  { %v2575_v47 = vpop.eup %2574 }
0x13f0   :  { %v1180_v48 = vadd.f32 1.0, %v2575_v47 }
0x13f2   :  { %2576 = vrcp.f32 %v1180_v48 }
0x13fc   :  { %v2577_v49 = vpop.eup %2576 }
0x13fd   :  { %v1195_v56 = vsub.f32 1.0, %v2577_v49  ;;  %v1201_v61 = vmul.f32 %v2577_v49, %v2994_v1 }
0x1455   :  { %v1186_v50 = vpop.permute.xlu0 %1185 }
0x1456   :  { %v1188_v51 = vmul.f32 %v2577_v49, %v1186_v50 }
0x1458   :  { %1190 = vrot.lane.b32.xlu1 %v1188_v51, %s2697_s23 }
0x14ca   :  { %v1191_v53 = vpop.permute.xlu1 %1190 }
0x14cb   :  { %v1193_v54 = vadd.f32 %v1191_v53, %v1175_v44 }
0x14cd   :  { %2578 = vtanh.f32 %v1193_v54 }
0x14d7   :  { %v2579_v55 = vpop.eup %2578 }
0x14d8   :  { %1197 = vrot.lane.b32.xlu0 %v2579_v55, %s2699_s16 }
0x14dc   :  { %1279 = vrot.lane.b32.xlu0 %v1170_v42, %s2696_s19 }
0x154a   :  { %v1198_v59 = vpop.permute.xlu0 %1197 }
0x154b   :  { %v1200_v2 = vmul.f32 %v1198_v59, %v1195_v56 }
0x154d   :  { %v3032_v63 = vadd.f32 %v1201_v61, %v1200_v2 }
0x154e   :  { %v1280_v9 = vpop.permute.xlu0 %1279 }
0x154f   :  { %1204 = vrot.lane.b32.xlu1 %v3032_v63, %s2699_s16 }
0x1553   :  { %1302 = vrot.lane.b32.xlu1 %v1300_v62, %s2699_s16 }
0x1557   :  { %1290 = vrot.lane.b32.xlu1 %v1172_v43, %s2696_s19 }
0x15c1   :  { %v1205_v3 = vpop.permute.xlu1 %1204 }
0x15c2   :  { %2272 = vmatmul.mubr.msk.f32.vlgmr.msra.gmra.mrb[10].mxu0 %vm173_vm3, %v1205_v3 }
0x15c3   :  { %2431 = vmatpush1.bf16.msra.mxu0 %v2788_v8  ;;  %1394 = vmatprep.mubr.f32.mxu0 %v2694_v0 }
0x15c4   :  { %2433 = vmatprep.subr.bf16.mxu0 %v2794_v12 }
0x15c5   :  { %v1303_v17 = vpop.permute.xlu1 %1302 }
0x15c7   :  { %2435 = vmatpush1.bf16.msra.mxu0 %v2800_v16 }
0x15c8   :  { %2437 = vmatprep.subr.bf16.mxu0 %v2803_v18 }
0x15c9   :  { %v1291_v23 = vpop.permute.xlu1 %1290 }
0x15cb   :  { %2439 = vmatpush1.bf16.msra.mxu0 %v2812_v24 }
0x15cc   :  { %2441 = vmatprep.subr.bf16.mxu0 %v2815_v25 }
0x15cf   :  { %2443 = vmatpush1.bf16.msra.mxu0 %v2818_v28 }
0x15d0   :  { %2466 = vmatprep.subr.bf16.mxu0 %v2698_v57 }
0x1695   :  { %v1274_v1 = vpop.f32.mrb[10].mxu0 }
0x1696   :  { %v1275_v5 = vadd.f32 %v1274_v1, %v2895_v6  ;;  %v2273_v7 = vpop.f32.mrb[11].mxu0 }
0x1698   :  { %v1282_v10 = vadd.f32 %v1280_v9, %v1275_v5  ;;  %v1293_v26 = vadd.f32 %v1291_v23, %v1275_v5 }
0x169a   :  { %v2147_v11 = vmul.f32 -1.442695, %v1282_v10  ;;  %v2148_v27 = vmul.f32 -1.442695, %v1293_v26 }
0x169c   :  { %2580 = vpow2.f32 %v2147_v11 }
0x16a6   :  { %v2581_v13 = vpop.eup %2580 }
0x16a7   :  { %v1286_v14 = vadd.f32 1.0, %v2581_v13 }
0x16a9   :  { %2582 = vrcp.f32 %v1286_v14 }
0x16b3   :  { %v2583_v15 = vpop.eup %2582 }
0x16b4   :  { %v1305_v19 = vmul.f32 %v2583_v15, %v1303_v17 }
0x16b6   :  { %1307 = vrot.lane.b32.xlu0 %v1305_v19, %s2697_s23 }
0x1728   :  { %v1308_v20 = vpop.permute.xlu0 %1307 }
0x1729   :  { %v1310_v21 = vadd.f32 %v1308_v20, %v1275_v5 }
0x172b   :  { %2584 = vtanh.f32 %v1310_v21 }
0x172c   :  { %2586 = vpow2.f32 %v2148_v27 }
0x1735   :  { %v2585_v22 = vpop.eup %2584 }
0x1736   :  { %1314 = vrot.lane.b32.xlu0 %v2585_v22, %s2699_s16  ;;  %v2587_v29 = vpop.eup %2586 }
0x1737   :  { %v1297_v31 = vadd.f32 1.0, %v2587_v29 }
0x1739   :  { %2588 = vrcp.f32 %v1297_v31 }
0x1743   :  { %v2589_v32 = vpop.eup %2588 }
0x1744   :  { %v1312_v33 = vsub.f32 1.0, %v2589_v32  ;;  %v1318_v41 = vmul.f32 %v2589_v32, %v3015_v39 }
0x17a8   :  { %v1315_v34 = vpop.permute.xlu0 %1314 }
0x17a9   :  { %v1317_v35 = vmul.f32 %v1315_v34, %v1312_v33 }
0x17ab   :  { %v3053_v42 = vadd.f32 %v1318_v41, %v1317_v35 }
0x17ad   :  { %v1326_v30 = vsel %vm173_vm3, %v1205_v3, %v3053_v42 }
0x17ae   :  { %2149 = vmatmul.mubr.msk.f32.vlgmr.msra.gmra.mrb[12].mxu0 %vm175_vm4, %v1326_v30 }
0x17af   :  { %2468 = vmatpush3.bf16.msra.mxu0 %v2858_v58  ;;  %2293 = vmatprep.mubr.msk.f32.mxu0 %vm2695_vm0, %v2694_v0 }
0x17b0   :  { %2469 = vmatprep.subr.bf16.mxu0 %v2698_v57 }
0x17b3   :  { %2471 = vmatpush3.bf16.msra.mxu0 %v2866_v60 }
0x17b4   :  { %2473 = vmatprep.subr.bf16.mxu0 %v2786_v4 }
0x1881   :  { %v1396_v43 = vpop.f32.mrb[12].mxu0 }
0x1882   :  { %v1409_v44 = vadd.f32 %v1396_v43, %v2835_v36  ;;  %v1398_v45 = vpop.f32.mrb[13].mxu0  ;;  %v1402_v47 = vadd.f32 %v1401_v46, %v1396_v43 }
0x1883   :  { %v1526_v1 = vadd.f32 %v1398_v45, %v2845_v52 }
0x1884   :  { %1411 = vrot.lane.b32.xlu1 %v1409_v44, %s2697_s23  ;;  %v2150_v48 = vmul.f32 -1.442695, %v1402_v47 }
0x1886   :  { %2590 = vpow2.f32 %v2150_v48  ;;  %v1627_v48 = vld [vmem:[#allocation2 + $0x6] sm:$0x1] }
0x1890   :  { %v2591_v49 = vpop.eup %2590 }
0x1891   :  { %v1406_v50 = vadd.f32 1.0, %v2591_v49 }
0x1893   :  { %2592 = vrcp.f32 %v1406_v50 }
0x189d   :  { %v2593_v51 = vpop.eup %2592 }
0x189e   :  { %v1421_v59 = vsub.f32 1.0, %v2593_v51  ;;  %v1427_v2 = vmul.f32 %v2593_v51, %v3032_v63 }
0x18f6   :  { %v1412_v53 = vpop.permute.xlu1 %1411 }
0x18f7   :  { %v1414_v54 = vmul.f32 %v2593_v51, %v1412_v53 }
0x18f9   :  { %1416 = vrot.lane.b32.xlu0 %v1414_v54, %s2697_s23 }
0x196b   :  { %v1417_v55 = vpop.permute.xlu0 %1416 }
0x196c   :  { %v1419_v4 = vadd.f32 %v1417_v55, %v1401_v46 }
0x196e   :  { %2594 = vtanh.f32 %v1419_v4 }
0x1978   :  { %v2595_v56 = vpop.eup %2594 }
0x1979   :  { %1423 = vrot.lane.b32.xlu1 %v2595_v56, %s2699_s16 }
0x197d   :  { %1505 = vrot.lane.b32.xlu1 %v1396_v43, %s2696_s19 }
0x19eb   :  { %v1424_v61 = vpop.permute.xlu1 %1423 }
0x19ec   :  { %v1426_v62 = vmul.f32 %v1424_v61, %v1421_v59 }
0x19ee   :  { %v3070_v3 = vadd.f32 %v1427_v2, %v1426_v62 }
0x19ef   :  { %v1506_v10 = vpop.permute.xlu1 %1505 }
0x19f0   :  { %1430 = vrot.lane.b32.xlu0 %v3070_v3, %s2699_s16 }
0x19f4   :  { %1528 = vrot.lane.b32.xlu0 %v1526_v1, %s2699_s16 }
0x19f8   :  { %1516 = vrot.lane.b32.xlu0 %v1398_v45, %s2696_s19 }
0x1a62   :  { %v1431_v5 = vpop.permute.xlu0 %1430 }
0x1a63   :  { %2283 = vmatmul.mubr.msk.f32.vlgmr.msra.gmra.mrb[10].mxu1 %vm173_vm3, %v1431_v5 }
0x1a64   :  { %2453 = vmatpush1.bf16.msra.mxu1 %v2788_v8  ;;  %1620 = vmatprep.mubr.f32.mxu1 %v2694_v0 }
0x1a65   :  { %2455 = vmatprep.subr.bf16.mxu1 %v2794_v12 }
0x1a66   :  { %v1529_v19 = vpop.permute.xlu0 %1528 }
0x1a68   :  { %2457 = vmatpush1.bf16.msra.mxu1 %v2800_v16 }
0x1a69   :  { %2459 = vmatprep.subr.bf16.mxu1 %v2803_v18 }
0x1a6a   :  { %v1517_v26 = vpop.permute.xlu0 %1516 }
0x1a6c   :  { %2461 = vmatpush1.bf16.msra.mxu1 %v2812_v24 }
0x1a6d   :  { %2463 = vmatprep.subr.bf16.mxu1 %v2815_v25 }
0x1a70   :  { %2465 = vmatpush1.bf16.msra.mxu1 %v2818_v28 }
0x1a71   :  { %2488 = vmatprep.subr.bf16.mxu1 %v2698_v57 }
0x1b36   :  { %v1500_v63 = vpop.f32.mrb[10].mxu1 }
0x1b37   :  { %v1501_v7 = vadd.f32 %v1500_v63, %v2895_v6  ;;  %v2284_v9 = vpop.f32.mrb[11].mxu1 }
0x1b39   :  { %v1508_v11 = vadd.f32 %v1506_v10, %v1501_v7  ;;  %v1519_v27 = vadd.f32 %v1517_v26, %v1501_v7 }
0x1b3b   :  { %v2152_v13 = vmul.f32 -1.442695, %v1508_v11  ;;  %v2153_v29 = vmul.f32 -1.442695, %v1519_v27 }
0x1b3d   :  { %2596 = vpow2.f32 %v2152_v13 }
0x1b47   :  { %v2597_v14 = vpop.eup %2596 }
0x1b48   :  { %v1512_v15 = vadd.f32 1.0, %v2597_v14 }
0x1b4a   :  { %2598 = vrcp.f32 %v1512_v15 }
0x1b54   :  { %v2599_v17 = vpop.eup %2598 }
0x1b55   :  { %v1531_v20 = vmul.f32 %v2599_v17, %v1529_v19 }
0x1b57   :  { %1533 = vrot.lane.b32.xlu1 %v1531_v20, %s2697_s23 }
0x1bc9   :  { %v1534_v21 = vpop.permute.xlu1 %1533 }
0x1bca   :  { %v1536_v22 = vadd.f32 %v1534_v21, %v1501_v7 }
0x1bcc   :  { %2600 = vtanh.f32 %v1536_v22 }
0x1bcd   :  { %2602 = vpow2.f32 %v2153_v29 }
0x1bd6   :  { %v2601_v23 = vpop.eup %2600 }
0x1bd7   :  { %1540 = vrot.lane.b32.xlu1 %v2601_v23, %s2699_s16  ;;  %v2603_v31 = vpop.eup %2602 }
0x1bd8   :  { %v1523_v32 = vadd.f32 1.0, %v2603_v31 }
0x1bda   :  { %2604 = vrcp.f32 %v1523_v32 }
0x1be4   :  { %v2605_v33 = vpop.eup %2604 }
0x1be5   :  { %v1538_v34 = vsub.f32 1.0, %v2605_v33  ;;  %v1544_v30 = vmul.f32 %v2605_v33, %v3053_v42 }
0x1c49   :  { %v1541_v35 = vpop.permute.xlu1 %1540 }
0x1c4a   :  { %v1543_v41 = vmul.f32 %v1541_v35, %v1538_v34  ;;  %v1853_v35 = vld [vmem:[#allocation2 + $0x7] sm:$0x1] }
0x1c4c   :  { %v3091_v43 = vadd.f32 %v1544_v30, %v1543_v41 }
0x1c4e   :  { %v1552_v44 = vsel %vm173_vm3, %v1431_v5, %v3091_v43 }
0x1c4f   :  { %2154 = vmatmul.mubr.msk.f32.vlgmr.msra.gmra.mrb[12].mxu1 %vm175_vm4, %v1552_v44 }
0x1c50   :  { %2490 = vmatpush3.bf16.msra.mxu1 %v2858_v58  ;;  %2304 = vmatprep.mubr.msk.f32.mxu1 %vm2695_vm0, %v2694_v0 }
0x1c51   :  { %2491 = vmatprep.subr.bf16.mxu1 %v2698_v57 }
0x1c54   :  { %2493 = vmatpush3.bf16.msra.mxu1 %v2866_v60 }
0x1c55   :  { %2494 = vmatprep.subr.bf16.mxu1 %v2698_v57 }
0x1d22   :  { %v1622_v45 = vpop.f32.mrb[12].mxu1 }
0x1d23   :  { %v1635_v46 = vadd.f32 %v1622_v45, %v2835_v36  ;;  %v1624_v47 = vpop.f32.mrb[13].mxu1  ;;  %v1628_v49 = vadd.f32 %v1627_v48, %v1622_v45 }
0x1d24   :  { %v1752_v5 = vadd.f32 %v1624_v47, %v2845_v52 }
0x1d25   :  { %1637 = vrot.lane.b32.xlu0 %v1635_v46, %s2697_s23  ;;  %v2155_v50 = vmul.f32 -1.442695, %v1628_v49 }
0x1d27   :  { %2606 = vpow2.f32 %v2155_v50 }
0x1d31   :  { %v2607_v58 = vpop.eup %2606 }
0x1d32   :  { %v1632_v51 = vadd.f32 1.0, %v2607_v58 }
0x1d34   :  { %2608 = vrcp.f32 %v1632_v51 }
0x1d3e   :  { %v2609_v53 = vpop.eup %2608 }
0x1d3f   :  { %v1647_v59 = vsub.f32 1.0, %v2609_v53  ;;  %v1653_v2 = vmul.f32 %v2609_v53, %v3070_v3 }
0x1d97   :  { %v1638_v54 = vpop.permute.xlu0 %1637 }
0x1d98   :  { %v1640_v55 = vmul.f32 %v2609_v53, %v1638_v54 }
0x1d9a   :  { %1642 = vrot.lane.b32.xlu1 %v1640_v55, %s2697_s23 }
0x1e0c   :  { %v1643_v60 = vpop.permute.xlu1 %1642 }
0x1e0d   :  { %v1645_v4 = vadd.f32 %v1643_v60, %v1627_v48 }
0x1e0f   :  { %2610 = vtanh.f32 %v1645_v4 }
0x1e19   :  { %v2611_v56 = vpop.eup %2610 }
0x1e1a   :  { %1649 = vrot.lane.b32.xlu0 %v2611_v56, %s2699_s16 }
0x1e1e   :  { %1731 = vrot.lane.b32.xlu0 %v1622_v45, %s2696_s19 }
0x1e8c   :  { %v1650_v61 = vpop.permute.xlu0 %1649 }
0x1e8d   :  { %v1652_v62 = vmul.f32 %v1650_v61, %v1647_v59 }
0x1e8f   :  { %v3108_v1 = vadd.f32 %v1653_v2, %v1652_v62  ;;  %v2642_v2 = vld [vmem:[%s3216_s7] sm:$0x1] }
0x1e90   :  { %v1732_v10 = vpop.permute.xlu0 %1731 }
0x1e91   :  { %1656 = vrot.lane.b32.xlu1 %v3108_v1, %s2699_s16 }
0x1e95   :  { %1754 = vrot.lane.b32.xlu1 %v1752_v5, %s2699_s16 }
0x1e99   :  { %1742 = vrot.lane.b32.xlu1 %v1624_v47, %s2696_s19 }
0x1f03   :  { %v1657_v63 = vpop.permute.xlu1 %1656 }
0x1f04   :  { %2294 = vmatmul.mubr.msk.f32.vlgmr.msra.gmra.mrb[14].mxu0 %vm173_vm3, %v1657_v63 }
0x1f05   :  { %2475 = vmatpush1.bf16.msra.mxu0 %v2788_v8  ;;  %1846 = vmatprep.mubr.f32.mxu0 %v2694_v0 }
0x1f06   :  { %2477 = vmatprep.subr.bf16.mxu0 %v2794_v12 }
0x1f07   :  { %v1755_v14 = vpop.permute.xlu1 %1754 }
0x1f09   :  { %2479 = vmatpush1.bf16.msra.mxu0 %v2800_v16 }
0x1f0a   :  { %2481 = vmatprep.subr.bf16.mxu0 %v2803_v18 }
0x1f0d   :  { %2483 = vmatpush1.bf16.msra.mxu0 %v2812_v24 }
0x1f0e   :  { %2485 = vmatprep.subr.bf16.mxu0 %v2815_v25 }
0x1f11   :  { %2487 = vmatpush1.bf16.msra.mxu0 %v2818_v28 }
0x1fd7   :  { %v1726_v3 = vpop.f32.mrb[14].mxu0 }
0x1fd8   :  { %v1727_v7 = vadd.f32 %v1726_v3, %v2895_v6  ;;  %v2295_v9 = vpop.f32.mrb[15].mxu0  ;;  %v1743_v6 = vpop.permute.xlu1 %1742 }
0x1fda   :  { %v1734_v8 = vadd.f32 %v1732_v10, %v1727_v7  ;;  %v1745_v15 = vadd.f32 %v1743_v6, %v1727_v7 }
0x1fdc   :  { %v2157_v11 = vmul.f32 -1.442695, %v1734_v8  ;;  %v2158_v17 = vmul.f32 -1.442695, %v1745_v15 }
0x1fde   :  { %2612 = vpow2.f32 %v2157_v11 }
0x1fe8   :  { %v2613_v13 = vpop.eup %2612 }
0x1fe9   :  { %v1738_v12 = vadd.f32 1.0, %v2613_v13 }
0x1feb   :  { %2614 = vrcp.f32 %v1738_v12 }
0x1ff5   :  { %v2615_v16 = vpop.eup %2614 }
0x1ff6   :  { %v1757_v18 = vmul.f32 %v2615_v16, %v1755_v14 }
0x1ff8   :  { %1759 = vrot.lane.b32.xlu0 %v1757_v18, %s2697_s23 }
0x206a   :  { %v1760_v24 = vpop.permute.xlu0 %1759 }
0x206b   :  { %v1762_v25 = vadd.f32 %v1760_v24, %v1727_v7  ;;  %v2008_v24 = vld [vmem:[%s3218_s9] sm:$0xff] }
0x206d   :  { %2616 = vtanh.f32 %v1762_v25 }
0x206e   :  { %2618 = vpow2.f32 %v2158_v17 }
0x2077   :  { %v2617_v28 = vpop.eup %2616 }
0x2078   :  { %1766 = vrot.lane.b32.xlu0 %v2617_v28, %s2699_s16  ;;  %v2619_v19 = vpop.eup %2618 }
0x2079   :  { %v1749_v20 = vadd.f32 1.0, %v2619_v19 }
0x207b   :  { %2620 = vrcp.f32 %v1749_v20 }
0x2085   :  { %v2621_v21 = vpop.eup %2620 }
0x2086   :  { %v1764_v22 = vsub.f32 1.0, %v2621_v21  ;;  %v1770_v27 = vmul.f32 %v2621_v21, %v3091_v43 }
0x20ea   :  { %v1767_v23 = vpop.permute.xlu0 %1766 }
0x20eb   :  { %v1769_v26 = vmul.f32 %v1767_v23, %v1764_v22 }
0x20ed   :  { %v3128_v29 = vadd.f32 %v1770_v27, %v1769_v26 }
0x20ef   :  { %v1778_v31 = vsel %vm173_vm3, %v1657_v63, %v3128_v29 }
0x20f0   :  { %2159 = vmatmul.mubr.msk.f32.vlgmr.msra.gmra.mrb[16].mxu0 %vm175_vm4, %v1778_v31 }
0x21c3   :  { %v1848_v32 = vpop.f32.mrb[16].mxu0 }
0x21c4   :  { %v1861_v33 = vadd.f32 %v1848_v32, %v2835_v36  ;;  %v1850_v34 = vpop.f32.mrb[17].mxu0  ;;  %v1854_v41 = vadd.f32 %v1853_v35, %v1848_v32 }
0x21c5   :  { %v1978_v60 = vadd.f32 %v1850_v34, %v2845_v52 }
0x21c6   :  { %1863 = vrot.lane.b32.xlu1 %v1861_v33, %s2697_s23  ;;  %v2160_v30 = vmul.f32 -1.442695, %v1854_v41 }
0x21c8   :  { %2622 = vpow2.f32 %v2160_v30 }
0x21d2   :  { %v2623_v44 = vpop.eup %2622 }
0x21d3   :  { %v1858_v45 = vadd.f32 1.0, %v2623_v44 }
0x21d5   :  { %2624 = vrcp.f32 %v1858_v45 }
0x21df   :  { %v2625_v46 = vpop.eup %2624 }
0x21e0   :  { %v1873_v36 = vsub.f32 1.0, %v2625_v46  ;;  %v1879_v53 = vmul.f32 %v2625_v46, %v3108_v1 }
0x2238   :  { %v1864_v47 = vpop.permute.xlu1 %1863 }
0x2239   :  { %v1866_v48 = vmul.f32 %v2625_v46, %v1864_v47 }
0x223b   :  { %1868 = vrot.lane.b32.xlu0 %v1866_v48, %s2697_s23 }
0x22ad   :  { %v1869_v49 = vpop.permute.xlu0 %1868 }
0x22ae   :  { %v1871_v50 = vadd.f32 %v1869_v49, %v1853_v35 }
0x22b0   :  { %2626 = vtanh.f32 %v1871_v50 }
0x22ba   :  { %v2627_v58 = vpop.eup %2626 }
0x22bb   :  { %1875 = vrot.lane.b32.xlu1 %v2627_v58, %s2699_s16 }
0x22bf   :  { %1957 = vrot.lane.b32.xlu1 %v1848_v32, %s2696_s19 }
0x232d   :  { %v1876_v51 = vpop.permute.xlu1 %1875 }
0x232e   :  { %v1878_v54 = vmul.f32 %v1876_v51, %v1873_v36 }
0x2330   :  { %v1880_v55 = vadd.f32 %v1879_v53, %v1878_v54 }
0x2331   :  { %v1958_v1 = vpop.permute.xlu1 %1957 }
0x2332   :  { %1882 = vrot.lane.b32.xlu0 %v1880_v55, %s2699_s16 }
0x2336   :  { %1980 = vrot.lane.b32.xlu0 %v1978_v60, %s2699_s16 }
0x233a   :  { %1968 = vrot.lane.b32.xlu0 %v1850_v34, %s2696_s19 }
0x233e   :  { %416 = vrot.lane.b32.xlu0 %v2901_v40, %s2699_s16 }
0x2342   :  { %869 = vrot.lane.b32.xlu0 %v2977_v37, %s2699_s16 }
0x2346   :  { %1321 = vrot.lane.b32.xlu0 %v3053_v42, %s2699_s16 }
0x234a   :  { %1773 = vrot.lane.b32.xlu0 %v3128_v29, %s2699_s16 }
0x23a4   :  { %v1883_v4 = vpop.permute.xlu0 %1882 }
0x23a5   :  { %2004 = vst.msk [vmem:[#allocation7] sm:$0x1] %vm419_vm6, %v1883_v4  ;;  %2305 = vmatmul.mubr.msk.f32.vlgmr.msra.gmra.mrb[14].mxu1 %vm173_vm3, %v1883_v4 }
0x23a6   :  { %2315 = vmatprep.mubr.msk.f32.mxu1 %vm2695_vm0, %v2694_v0 }
0x23a8   :  { %v1981_v52 = vpop.permute.xlu0 %1980 }
0x23ac   :  { %v1969_v40 = vpop.permute.xlu0 %1968 }
0x23b0   :  { %v417_v56 = vpop.permute.xlu0 %416 }
0x23b1   :  { %420 = vst.msk [vmem:[#allocation3] sm:$0x1] %vm419_vm6, %v417_v56 }
0x23b4   :  { %v870_v37 = vpop.permute.xlu0 %869 }
0x23b5   :  { %872 = vst.msk [vmem:[#allocation3 + $0x2] sm:$0x1] %vm419_vm6, %v870_v37 }
0x23b8   :  { %v1322_v42 = vpop.permute.xlu0 %1321 }
0x23b9   :  { %1324 = vst.msk [vmem:[#allocation3 + $0x4] sm:$0x1] %vm419_vm6, %v1322_v42 }
0x23bc   :  { %v1774_v59 = vpop.permute.xlu0 %1773 }
0x23bd   :  { %1776 = vst.msk [vmem:[#allocation3 + $0x6] sm:$0x1] %vm419_vm6, %v1774_v59 }
0x2478   :  { %v1952_v61 = vpop.f32.mrb[14].mxu1 }
0x2479   :  { %v1953_v0 = vadd.f32 %v2642_v2, %v1952_v61  ;;  %v2306_v62 = vpop.f32.mrb[15].mxu1 }
0x247b   :  { %v1960_v5 = vadd.f32 %v1958_v1, %v1953_v0  ;;  %v1971_v12 = vadd.f32 %v1969_v40, %v1953_v0 }
0x247d   :  { %v2162_v63 = vmul.f32 -1.442695, %v1960_v5  ;;  %v2163_v16 = vmul.f32 -1.442695, %v1971_v12 }
0x247f   :  { %2628 = vpow2.f32 %v2162_v63 }
0x2489   :  { %v2629_v3 = vpop.eup %2628 }
0x248a   :  { %v1964_v7 = vadd.f32 1.0, %v2629_v3 }
0x248c   :  { %2630 = vrcp.f32 %v1964_v7 }
0x2496   :  { %v2631_v9 = vpop.eup %2630 }
0x2497   :  { %v1983_v10 = vmul.f32 %v2631_v9, %v1981_v52 }
0x2499   :  { %1985 = vrot.lane.b32.xlu1 %v1983_v10, %s2697_s23 }
0x250b   :  { %v1986_v8 = vpop.permute.xlu1 %1985 }
0x250c   :  { %v1988_v11 = vadd.f32 %v1986_v8, %v1953_v0 }
0x250e   :  { %2632 = vtanh.f32 %v1988_v11 }
0x250f   :  { %2634 = vpow2.f32 %v2163_v16 }
0x2518   :  { %v2633_v13 = vpop.eup %2632 }
0x2519   :  { %1992 = vrot.lane.b32.xlu1 %v2633_v13, %s2699_s16  ;;  %v2635_v14 = vpop.eup %2634 }
0x251a   :  { %v1975_v18 = vadd.f32 1.0, %v2635_v14 }
0x251c   :  { %2636 = vrcp.f32 %v1975_v18 }
0x251d   :  { %643 = vrot.lane.b32.xlu1 %v2939_v38, %s2699_s16  ;;  %v2009_v38 = vld [vmem:[%s3218_s9 + $0x8] sm:$0xff] }
0x251e   :  { %v2495_v25 = vpack.c.bf16 %v2009_v38, %v2008_v24 }
0x2520   :  { %2496 = vmatpush3.bf16.msra.mxu1 %v2495_v25 }
0x2521   :  { %1095 = vrot.lane.b32.xlu1 %v3015_v39, %s2699_s16  ;;  %v2010_v39 = vld [vmem:[%s3218_s9 + $0x10] sm:$0xff]  ;;  %2497 = vmatprep.subr.bf16.mxu1 %v2698_v57 }
0x2525   :  { %1547 = vrot.lane.b32.xlu1 %v3091_v43, %s2699_s16  ;;  %v2011_v43 = vld [vmem:[%s3218_s9 + $0x18] sm:$0xff]  ;;  %s2700_s9 = smov [#allocation7]  }
0x2526   :  { %v2498_v28 = vpack.c.bf16 %v2011_v43, %v2010_v39  ;;  %v2637_v6 = vpop.eup %2636  ;;  %s2108_s5 = sshll.u32 %s2700_s9, 4  ;;  %s2109_s5 = int_to_ptr.vmem [resolvable:$true] %s2108_s5 }
0x2527   :  { %v1990_v15 = vsub.f32 1.0, %v2637_v6  ;;  %v1996_v20 = vmul.f32 %v2637_v6, %v3128_v29  ;;  %s2665_s24 = scalar_lea.vmem %s2109_s5, 32  ;;  %p2670_p9 = scmp.lt.s32.totalorder %s2109_s5, %s2109_s5 }
0x2528   :  { %2499 = vmatpush3.bf16.msra.mxu1 %v2498_v28  ;;  %p2666_p8 = scmp.ne.s32.totalorder %s2109_s5, %s2665_s24  ;;  %p2671_p10 = scmp.lt.s32.totalorder %s2665_s24, %s2665_s24 }
0x252a   :  { %p2672_p11 = por %p2671_p10, %p2670_p9 }
0x252c   :  { %p2673_p12 = pnand %p2672_p11, %p2666_p8 }
0x258b   :  { %v1993_v17 = vpop.permute.xlu1 %1992 }
0x258c   :  { %v1995_v19 = vmul.f32 %v1993_v17, %v1990_v15 }
0x258e   :  { %v1997_v21 = vadd.f32 %v1996_v20, %v1995_v19 }
0x258f   :  { %v644_v22 = vpop.permute.xlu1 %643 }
0x2590   :  { %646 = vst.msk [vmem:[#allocation3 + $0x1] sm:$0x1] %vm419_vm6, %v644_v22  ;;  %1999 = vrot.lane.b32.xlu1 %v1997_v21, %s2699_s16 }
0x2593   :  { %v1096_v23 = vpop.permute.xlu1 %1095 }
0x2594   :  { %1098 = vst.msk [vmem:[#allocation3 + $0x3] sm:$0x1] %vm419_vm6, %v1096_v23 }
0x2597   :  { %v1548_v26 = vpop.permute.xlu1 %1547 }
0x2598   :  { %1550 = vst.msk [vmem:[#allocation3 + $0x5] sm:$0x1] %vm419_vm6, %v1548_v26 }
0x2602   :  { %v2000_v27 = vpop.permute.xlu1 %1999 }
0x2603   :  { %2002 = vst.msk [vmem:[#allocation3 + $0x7] sm:$0x1] %vm419_vm6, %v2000_v27  ;;  %2005 = vst.msk [vmem:[#allocation7 + $0x1] sm:$0x1] %vm419_vm6, %v2000_v27 }
0x260a   :  { %v2006_v57 = vld [vmem:[#allocation3] sm:$0xff] }
0x260b   :  { %v2007_v31 = vmax.f32 %v2006_v57, 0.0 }
0x260d   :  { %2316 = vmatmul.mubr.msk.f32.vlgmr.msra.gmra.mrb[16].mxu1 %vm173_vm3, %v2007_v31 }
0x260e   :  { %2676 = shalt.err (!%p2673_p12)
}
0x260f   :  { %s2677_s1 = scalar_lea.hbm %s3221_s12, 32 }
0x2610   :  { %p2678_p13 = scmp.ne.s32.totalorder %s3221_s12, %s2677_s1  ;;  %p2681_p0 = scmp.lt.u32.totalorder %s2677_s1, %s3221_s12 }
0x2612   :  { %p2683_p1 = pnand %p2681_p0, %p2678_p13 }
0x2614   :  { %2686 = shalt.err (!%p2683_p1)
}
0x2615   :  { %2111 = dma.vmem_to_hbm [thread:$0]  %s2109_s5, 32, %s3221_s12, [#allocation6]   ;;  %v2164_v29 = vld [vmem:[%s3219_s10] ss:$0 sm:$0xff]  ;;  %vm2098_vm7 = vcmask 15360  }
0x26e0   :  { %v2088_v32 = vpop.f32.mrb[16].mxu1 }
0x26e1   :  { %v2089_v33 = vadd.f32 %v2164_v29, %v2088_v32  ;;  %v2317_v34 = vpop.f32.mrb[17].mxu1 }
0x26e3   :  { %v2166_v35 = vmul.f32 -1.442695, %v2089_v33 }
0x26e5   :  { %2638 = vpow2.f32 %v2166_v35 }
0x26ef   :  { %v2639_v41 = vpop.eup %2638 }
0x26f0   :  { %v2095_v30 = vadd.f32 1.0, %v2639_v41 }
0x26f2   :  { %2640 = vrcp.f32 %v2095_v30 }
0x26fc   :  { %v2641_v44 = vpop.eup %2640 }
0x26fd   :  { %2099 = vst.msk [vmem:[%s3220_s11] sm:$0xff] %vm2098_vm7, %v2641_v44 }
0x26fe   :  { %2689 = dma.done.wait [#allocation6], 32  }
0x26ff   :  { %2690 = vsyncadd [#allocation6], 4294967264 }
0x2700   :  { %2117 = vsyncpa [#allocation5], 1 }
0x2701   :  { %2118 = vsyncpa [#allocation6], 1 }

</bundles_post_ra>
